<compile_context>
chip_gen: v7x
topology: tpu7x:2x2x1
jax: 0.10.0
libtpu: 0.0.40
codegen_flags: <defaults>
</compile_context>

<pallas_src>
import functools
import math

import jax
import jax.numpy as jnp
from jax.experimental import pallas as pl
from jax.experimental.pallas import tpu as pltpu


def _layer_norm(x, gamma, beta, eps=1e-5):
    mean = jnp.mean(x, axis=-1, keepdims=True)
    var = jnp.mean(jnp.square(x - mean), axis=-1, keepdims=True)
    return (x - mean) * jax.lax.rsqrt(var + eps) * gamma + beta


# -----------------------------------------------------------------------------
# Fused kernel: one grid step = (one batch block, one encoder layer).
# The output block is VMEM-resident across the layer axis (constant index map)
# and carries the activation from layer to layer.
# -----------------------------------------------------------------------------
def _fused_encoder_kernel(
    emb_ref, pos_ref, mask_ref,
    wqkv_ref, bqkv_ref, wo_ref, vec_ref, w1_ref, b1_ref, w2_ref,
    out_ref, *, num_heads, embed_scale,
):
    layer = pl.program_id(1)
    NB, S, H = out_ref.shape
    hd = H // num_heads
    inv_sqrt_hd = 1.0 / math.sqrt(hd)

    # ---- layer 0: fused  word_emb * scale + pos_emb  (pos broadcasts over NB)
    @pl.when(layer == 0)
    def _():
        out_ref[...] = emb_ref[...] * embed_scale + pos_ref[...]

    x = out_ref[...]                          # (NB, S, H) resident activation, f32
    x2 = x.reshape(NB * S, H)                 # row-major slab for projections/FFN

    # ---- fused Q/K/V projection: one (NB*S, H) x (H, 3H) bf16 MXU pass -------
    qkv = jnp.dot(x2.astype(jnp.bfloat16), wqkv_ref[0],
                  preferred_element_type=jnp.float32) + bqkv_ref[0]
    q = qkv[:, 0:H].astype(jnp.bfloat16).reshape(NB, S, H)
    k = qkv[:, H:2 * H].astype(jnp.bfloat16).reshape(NB, S, H)
    v = qkv[:, 2 * H:3 * H].astype(jnp.bfloat16).reshape(NB, S, H)

    keep = mask_ref[...] > 0.0                # (NB, 1, S); hoisted out of head loop

    # ---- per-head attention via static lane slices (no relayout transposes) --
    ctx_heads = []
    for h in range(num_heads):
        sl = slice(h * hd, (h + 1) * hd)
        energy = jnp.einsum("bqd,bkd->bqk", q[:, :, sl], k[:, :, sl],
                            preferred_element_type=jnp.float32) * inv_sqrt_hd
        energy = jnp.where(keep, energy, -1e10)          # broadcast over q axis
        m = jnp.max(energy, axis=-1, keepdims=True)
        p = jnp.exp(energy - m)
        denom = jnp.sum(p, axis=-1, keepdims=True)
        attn = p * pl.reciprocal(denom, approx=True)     # EUP divide
        ctx_heads.append(
            jnp.einsum("bqk,bkd->bqd", attn.astype(jnp.bfloat16), v[:, :, sl],
                       preferred_element_type=jnp.float32))
    ctx = jnp.concatenate(ctx_heads, axis=-1).reshape(NB * S, H)

    vecs = vec_ref[0]                         # (4, H) = [bo, ln_gamma, ln_beta, b2]
    bo = vecs[0:1]
    gamma = vecs[1:2]
    beta = vecs[2:3]
    b2 = vecs[3:4]

    attended = jnp.dot(ctx.astype(jnp.bfloat16), wo_ref[0],
                       preferred_element_type=jnp.float32) + bo

    # ---- residual + (shared) LayerNorm, f32 ----------------------------------
    new_src = _layer_norm(x2 + attended, gamma, beta)

    # ---- positionwise feed-forward --------------------------------------------
    h1 = jnp.maximum(
        jnp.dot(new_src.astype(jnp.bfloat16), w1_ref[0],
                preferred_element_type=jnp.float32) + b1_ref[0], 0.0)
    ff = jnp.dot(h1.astype(jnp.bfloat16), w2_ref[0],
                 preferred_element_type=jnp.float32) + b2

    # ---- second residual + SAME LayerNorm params; stays resident in VMEM ------
    out_ref[...] = _layer_norm(new_src + ff, gamma, beta).reshape(NB, S, H)


# -----------------------------------------------------------------------------
# Parameter construction (deterministic, synthetic, stacked per layer)
# -----------------------------------------------------------------------------
def init_params(key, vocab_size, hidden, num_layers, pf_dim, max_length):
    H, PF, L = hidden, pf_dim, num_layers
    keys = jax.random.split(key, 8)
    s_h = 1.0 / math.sqrt(H)
    s_pf = 1.0 / math.sqrt(PF)

    wq = s_h * jax.random.normal(keys[2], (L, H, H), jnp.float32)
    wk = s_h * jax.random.normal(keys[3], (L, H, H), jnp.float32)
    wv = s_h * jax.random.normal(keys[4], (L, H, H), jnp.float32)
    wo = s_h * jax.random.normal(keys[5], (L, H, H), jnp.float32)
    w1 = s_h * jax.random.normal(keys[6], (L, H, PF), jnp.float32)
    w2 = s_pf * jax.random.normal(keys[7], (L, PF, H), jnp.float32)

    vecs = jnp.stack(
        [jnp.zeros((L, H), jnp.float32),   # bo
         jnp.ones((L, H), jnp.float32),    # LayerNorm gamma
         jnp.zeros((L, H), jnp.float32),   # LayerNorm beta
         jnp.zeros((L, H), jnp.float32)],  # b2
        axis=1)                            # (L, 4, H)

    return {
        "word_emb": 0.02 * jax.random.normal(keys[0], (vocab_size, H), jnp.float32),
        "pos_emb": 0.02 * jax.random.normal(keys[1], (max_length, H), jnp.float32),
        # bf16 weight storage: native MXU rate, half the HBM/VMEM weight traffic.
        "wqkv": jnp.concatenate([wq, wk, wv], axis=-1).astype(jnp.bfloat16),  # (L,H,3H)
        "bqkv": jnp.zeros((L, 1, 3 * H), jnp.float32),
        "wo": wo.astype(jnp.bfloat16),
        "vecs": vecs,
        "w1": w1.astype(jnp.bfloat16),
        "b1": jnp.zeros((L, 1, PF), jnp.float32),
        "w2": w2.astype(jnp.bfloat16),
    }


# -----------------------------------------------------------------------------
# Full Encoder forward: a single fused pallas_call
# -----------------------------------------------------------------------------
def encoder_forward(src_ids, src_mask, params, num_heads, batch_block=None):
    """src_ids: (N, S) int32, src_mask: (N, 1, 1, S) int -> (N, S, H) float32."""
    N, S = src_ids.shape
    H = params["word_emb"].shape[1]
    L, _, PF = params["w1"].shape

    # Whole batch per grid step at these tiny shapes (amortizes per-step
    # overhead and raises the matmul M dimension); can be split for megacore.
    NB = N if batch_block is None else batch_block
    assert N % NB == 0

    # Glue: embedding gather stays in plain JAX; pos stays (1, S, H).
    emb = jnp.take(params["word_emb"], src_ids, axis=0)          # (N, S, H)
    pos = params["pos_emb"][None, :S, :]                         # (1, S, H)
    mask = src_mask.reshape(N, 1, S).astype(jnp.float32)

    kernel = functools.partial(_fused_encoder_kernel, num_heads=num_heads,
                               embed_scale=math.sqrt(float(H)))

    return pl.pallas_call(
        kernel,
        out_shape=jax.ShapeDtypeStruct((N, S, H), jnp.float32),
        grid_spec=pltpu.PrefetchScalarGridSpec(
            num_scalar_prefetch=0,
            grid=(N // NB, L),                                   # (batch, layer)
            in_specs=[
                pl.BlockSpec((NB, S, H), lambda b, l: (b, 0, 0)),      # emb
                pl.BlockSpec((1, S, H), lambda b, l: (0, 0, 0)),       # pos (shared)
                pl.BlockSpec((NB, 1, S), lambda b, l: (b, 0, 0)),      # mask
                pl.BlockSpec((1, H, 3 * H), lambda b, l: (l, 0, 0)),   # wqkv
                pl.BlockSpec((1, 1, 3 * H), lambda b, l: (l, 0, 0)),   # bqkv
                pl.BlockSpec((1, H, H), lambda b, l: (l, 0, 0)),       # wo
                pl.BlockSpec((1, 4, H), lambda b, l: (l, 0, 0)),       # bo|gamma|beta|b2
                pl.BlockSpec((1, H, PF), lambda b, l: (l, 0, 0)),      # w1
                pl.BlockSpec((1, 1, PF), lambda b, l: (l, 0, 0)),      # b1
                pl.BlockSpec((1, PF, H), lambda b, l: (l, 0, 0)),      # w2
            ],
            # Layer-constant index => output block stays in VMEM across the
            # layer loop and serves as the activation carry; written back to
            # HBM only when the batch block changes / at the end.
            out_specs=pl.BlockSpec((NB, S, H), lambda b, l: (b, 0, 0)),
        ),
        compiler_params=pltpu.CompilerParams(
            dimension_semantics=("parallel", "arbitrary"),
            vmem_limit_bytes=32 * 1024 * 1024,
        ),
    )(emb, pos, mask,
      params["wqkv"], params["bqkv"], params["wo"], params["vecs"],
      params["w1"], params["b1"], params["w2"])


# -----------------------------------------------------------------------------
if __name__ == "__main__":
    # Small, module-consistent shapes.
    VOCAB = 50
    HIDDEN = 32
    NUM_LAYERS = 2
    NUM_HEADS = 4
    PF_DIM = 64
    MAX_LEN = 100
    N, S = 2, 8

    key = jax.random.PRNGKey(0)
    pkey, dkey, mkey = jax.random.split(key, 3)

    params = init_params(pkey, VOCAB, HIDDEN, NUM_LAYERS, PF_DIM, MAX_LEN)

    src_ids = jax.random.randint(dkey, (N, S), 0, VOCAB, dtype=jnp.int32)
    # Mask: first sequence fully valid, second has last two positions padded.
    src_mask = jnp.ones((N, 1, 1, S), dtype=jnp.int32)
    src_mask = src_mask.at[1, 0, 0, S - 2:].set(0)

    out = encoder_forward(src_ids, src_mask, params, NUM_HEADS)
    jax.block_until_ready(out)

    assert out.shape == (N, S, HIDDEN)
    assert bool(jnp.all(jnp.isfinite(out)))
    print("KERNEL_OK")
</pallas_src>

<mosaic_0001>
module attributes {stable_mosaic.version = 11 : i64} {
  func.func @_fused_encoder_kernel(%arg0: i32, %arg1: i32, %arg2: memref<2x8x32xf32, #tpu.memory_space<vmem>>, %arg3: memref<1x8x32xf32, #tpu.memory_space<vmem>>, %arg4: memref<2x1x8xf32, #tpu.memory_space<vmem>>, %arg5: memref<1x32x96xbf16, #tpu.memory_space<vmem>>, %arg6: memref<1x1x96xf32, #tpu.memory_space<vmem>>, %arg7: memref<1x32x32xbf16, #tpu.memory_space<vmem>>, %arg8: memref<1x4x32xf32, #tpu.memory_space<vmem>>, %arg9: memref<1x32x64xbf16, #tpu.memory_space<vmem>>, %arg10: memref<1x1x64xf32, #tpu.memory_space<vmem>>, %arg11: memref<1x64x32xbf16, #tpu.memory_space<vmem>>, %arg12: memref<2x8x32xf32, #tpu.memory_space<vmem>>) attributes {dimension_semantics = [#tpu.dimension_semantics<parallel>, #tpu.dimension_semantics<arbitrary>], iteration_bounds = array<i64: 1, 2>, scalar_prefetch = 0 : i64, scratch_operands = 0 : i64, tpu.core_type = #tpu.core_type<tc>, window_params = [{transform_indices = @transform_0, window_bounds = array<i64: 2, 8, 32>}, {pipeline_mode = #tpu.pipeline_mode<synchronous>, transform_indices = @transform_1, window_bounds = array<i64: 1, 8, 32>}, {transform_indices = @transform_2, window_bounds = array<i64: 2, 1, 8>}, {transform_indices = @transform_3, window_bounds = array<i64: 1, 32, 96>}, {transform_indices = @transform_4, window_bounds = array<i64: 1, 1, 96>}, {transform_indices = @transform_5, window_bounds = array<i64: 1, 32, 32>}, {transform_indices = @transform_6, window_bounds = array<i64: 1, 4, 32>}, {transform_indices = @transform_7, window_bounds = array<i64: 1, 32, 64>}, {transform_indices = @transform_8, window_bounds = array<i64: 1, 1, 64>}, {transform_indices = @transform_9, window_bounds = array<i64: 1, 64, 32>}, {transform_indices = @transform_10, window_bounds = array<i64: 2, 8, 32>}]} {
    %c0_i32 = arith.constant 0 : i32
    %0 = arith.cmpi eq, %arg1, %c0_i32 : i32
    %1 = arith.extui %0 : i1 to i32
    %c0_i32_0 = arith.constant 0 : i32
    %2 = arith.cmpi ne, %1, %c0_i32_0 : i32
    scf.if %2 {
      %c0_69 = arith.constant 0 : index
      %c0_70 = arith.constant 0 : index
      %c0_71 = arith.constant 0 : index
      %191 = vector.load %arg2[%c0_69, %c0_70, %c0_71] : memref<2x8x32xf32, #tpu.memory_space<vmem>>, vector<2x8x32xf32>
      %cst_72 = arith.constant 5.65685415 : f32
      %192 = vector.broadcast %cst_72 : f32 to vector<2x8x32xf32>
      %193 = arith.mulf %191, %192 : vector<2x8x32xf32>
      %c0_73 = arith.constant 0 : index
      %c0_74 = arith.constant 0 : index
      %c0_75 = arith.constant 0 : index
      %194 = vector.load %arg3[%c0_73, %c0_74, %c0_75] : memref<1x8x32xf32, #tpu.memory_space<vmem>>, vector<1x8x32xf32>
      %195 = vector.broadcast %194 : vector<1x8x32xf32> to vector<2x8x32xf32>
      %196 = arith.addf %193, %195 : vector<2x8x32xf32>
      %c0_76 = arith.constant 0 : index
      %c0_77 = arith.constant 0 : index
      %c0_78 = arith.constant 0 : index
      %197 = vector.load %arg12[%c0_76, %c0_77, %c0_78] : memref<2x8x32xf32, #tpu.memory_space<vmem>>, vector<2x8x32xf32>
      tpu.vector_store %arg12[%c0_76, %c0_77, %c0_78], %196 {strides = array<i32>} : memref<2x8x32xf32, #tpu.memory_space<vmem>>, vector<2x8x32xf32>,
    } else {
    }
    %c0 = arith.constant 0 : index
    %c0_1 = arith.constant 0 : index
    %c0_2 = arith.constant 0 : index
    %3 = vector.load %arg12[%c0, %c0_1, %c0_2] : memref<2x8x32xf32, #tpu.memory_space<vmem>>, vector<2x8x32xf32>
    %4 = vector.shape_cast %3 : vector<2x8x32xf32> to vector<16x32xf32>
    %5 = arith.truncf %4 : vector<16x32xf32> to vector<16x32xbf16>
    %c0_3 = arith.constant 0 : index
    %c0_4 = arith.constant 0 : index
    %c0_5 = arith.constant 0 : index
    %6 = vector.load %arg5[%c0_3, %c0_4, %c0_5] : memref<1x32x96xbf16, #tpu.memory_space<vmem>>, vector<1x32x96xbf16>
    %7 = vector.shape_cast %6 : vector<1x32x96xbf16> to vector<32x96xbf16>
    %cst = arith.constant dense<0.000000e+00> : vector<16x96xf32>
    %8 = tpu.matmul %5, %7, %cst {dimension_numbers = #tpu.dot_dimension_numbers<[1], [0], [0], [1], [0, 0, 1, 1], [], []>} : vector<16x32xbf16>, vector<32x96xbf16>, vector<16x96xf32> -> vector<16x96xf32>
    %c0_6 = arith.constant 0 : index
    %c0_7 = arith.constant 0 : index
    %c0_8 = arith.constant 0 : index
    %9 = vector.load %arg6[%c0_6, %c0_7, %c0_8] : memref<1x1x96xf32, #tpu.memory_space<vmem>>, vector<1x1x96xf32>
    %10 = vector.shape_cast %9 : vector<1x1x96xf32> to vector<1x96xf32>
    %11 = vector.broadcast %10 : vector<1x96xf32> to vector<16x96xf32>
    %12 = arith.addf %8, %11 : vector<16x96xf32>
    %13 = vector.extract_strided_slice %12 {offsets = [0, 0], sizes = [16, 32], strides = [1, 1]} : vector<16x96xf32> to vector<16x32xf32>
    %14 = arith.truncf %13 : vector<16x32xf32> to vector<16x32xbf16>
    %15 = vector.shape_cast %14 : vector<16x32xbf16> to vector<2x8x32xbf16>
    %16 = vector.extract_strided_slice %12 {offsets = [0, 32], sizes = [16, 32], strides = [1, 1]} : vector<16x96xf32> to vector<16x32xf32>
    %17 = arith.truncf %16 : vector<16x32xf32> to vector<16x32xbf16>
    %18 = vector.shape_cast %17 : vector<16x32xbf16> to vector<2x8x32xbf16>
    %19 = vector.extract_strided_slice %12 {offsets = [0, 64], sizes = [16, 32], strides = [1, 1]} : vector<16x96xf32> to vector<16x32xf32>
    %20 = arith.truncf %19 : vector<16x32xf32> to vector<16x32xbf16>
    %21 = vector.shape_cast %20 : vector<16x32xbf16> to vector<2x8x32xbf16>
    %c0_9 = arith.constant 0 : index
    %c0_10 = arith.constant 0 : index
    %c0_11 = arith.constant 0 : index
    %22 = vector.load %arg4[%c0_9, %c0_10, %c0_11] : memref<2x1x8xf32, #tpu.memory_space<vmem>>, vector<2x1x8xf32>
    %cst_12 = arith.constant 0.000000e+00 : f32
    %23 = vector.broadcast %cst_12 : f32 to vector<2x1x8xf32>
    %24 = arith.cmpf ogt, %22, %23 : vector<2x1x8xf32>
    %25 = vector.extract_strided_slice %15 {offsets = [0, 0, 0], sizes = [2, 8, 8], strides = [1, 1, 1]} : vector<2x8x32xbf16> to vector<2x8x8xbf16>
    %26 = vector.extract_strided_slice %18 {offsets = [0, 0, 0], sizes = [2, 8, 8], strides = [1, 1, 1]} : vector<2x8x32xbf16> to vector<2x8x8xbf16>
    "tpu.trace_start"() <{level = 10 : i32, message = "bqd,bkd->bqk"}> : () -> ()
    %cst_13 = arith.constant dense<0.000000e+00> : vector<2x8x8xf32>
    %27 = tpu.matmul %25, %26, %cst_13 {dimension_numbers = #tpu.dot_dimension_numbers<[2], [2], [1], [1], [0, 0, 0, 1, 1, 1], [0], [0]>} : vector<2x8x8xbf16>, vector<2x8x8xbf16>, vector<2x8x8xf32> -> vector<2x8x8xf32>
    "tpu.trace_stop"() : () -> ()
    %cst_14 = arith.constant 0.353553385 : f32
    %28 = vector.broadcast %cst_14 : f32 to vector<2x8x8xf32>
    %29 = arith.mulf %27, %28 : vector<2x8x8xf32>
    %cst_15 = arith.constant -1.000000e+10 : f32
    %30 = vector.shape_cast %24 : vector<2x1x8xi1> to vector<2x1x8xi1>
    %31 = vector.broadcast %30 : vector<2x1x8xi1> to vector<2x8x8xi1>
    %32 = vector.broadcast %cst_15 : f32 to vector<2x8x8xf32>
    %33 = arith.select %31, %29, %32 : vector<2x8x8xi1>, vector<2x8x8xf32>
    %cst_16 = arith.constant dense<0xFF800000> : vector<2x8xf32>
    %34 = vector.multi_reduction <maximumf>, %33, %cst_16 [2] : vector<2x8x8xf32> to vector<2x8xf32>
    %35 = vector.shape_cast %34 : vector<2x8xf32> to vector<2x8x1xf32>
    %36 = vector.broadcast %35 : vector<2x8x1xf32> to vector<2x8x8xf32>
    %37 = arith.subf %33, %36 : vector<2x8x8xf32>
    %38 = math.exp %37 : vector<2x8x8xf32>
    %cst_17 = arith.constant dense<0.000000e+00> : vector<2x8xf32>
    %39 = vector.multi_reduction <add>, %38, %cst_17 [2] : vector<2x8x8xf32> to vector<2x8xf32>
    %40 = vector.shape_cast %39 : vector<2x8xf32> to vector<2x8x1xf32>
    %41 = tpu.reciprocal %40 {approx = true} : vector<2x8x1xf32> -> vector<2x8x1xf32>
    %42 = vector.broadcast %41 : vector<2x8x1xf32> to vector<2x8x8xf32>
    %43 = arith.mulf %38, %42 : vector<2x8x8xf32>
    %44 = arith.truncf %43 : vector<2x8x8xf32> to vector<2x8x8xbf16>
    %45 = vector.extract_strided_slice %21 {offsets = [0, 0, 0], sizes = [2, 8, 8], strides = [1, 1, 1]} : vector<2x8x32xbf16> to vector<2x8x8xbf16>
    "tpu.trace_start"() <{level = 10 : i32, message = "bqk,bkd->bqd"}> : () -> ()
    %cst_18 = arith.constant dense<0.000000e+00> : vector<2x8x8xf32>
    %46 = tpu.matmul %44, %45, %cst_18 {dimension_numbers = #tpu.dot_dimension_numbers<[2], [1], [1], [2], [0, 0, 0, 1, 1, 2], [0], [0]>} : vector<2x8x8xbf16>, vector<2x8x8xbf16>, vector<2x8x8xf32> -> vector<2x8x8xf32>
    "tpu.trace_stop"() : () -> ()
    %47 = vector.extract_strided_slice %15 {offsets = [0, 0, 8], sizes = [2, 8, 8], strides = [1, 1, 1]} : vector<2x8x32xbf16> to vector<2x8x8xbf16>
    %48 = vector.extract_strided_slice %18 {offsets = [0, 0, 8], sizes = [2, 8, 8], strides = [1, 1, 1]} : vector<2x8x32xbf16> to vector<2x8x8xbf16>
    "tpu.trace_start"() <{level = 10 : i32, message = "bqd,bkd->bqk"}> : () -> ()
    %cst_19 = arith.constant dense<0.000000e+00> : vector<2x8x8xf32>
    %49 = tpu.matmul %47, %48, %cst_19 {dimension_numbers = #tpu.dot_dimension_numbers<[2], [2], [1], [1], [0, 0, 0, 1, 1, 1], [0], [0]>} : vector<2x8x8xbf16>, vector<2x8x8xbf16>, vector<2x8x8xf32> -> vector<2x8x8xf32>
    "tpu.trace_stop"() : () -> ()
    %cst_20 = arith.constant 0.353553385 : f32
    %50 = vector.broadcast %cst_20 : f32 to vector<2x8x8xf32>
    %51 = arith.mulf %49, %50 : vector<2x8x8xf32>
    %cst_21 = arith.constant -1.000000e+10 : f32
    %52 = vector.shape_cast %24 : vector<2x1x8xi1> to vector<2x1x8xi1>
    %53 = vector.broadcast %52 : vector<2x1x8xi1> to vector<2x8x8xi1>
    %54 = vector.broadcast %cst_21 : f32 to vector<2x8x8xf32>
    %55 = arith.select %53, %51, %54 : vector<2x8x8xi1>, vector<2x8x8xf32>
    %cst_22 = arith.constant dense<0xFF800000> : vector<2x8xf32>
    %56 = vector.multi_reduction <maximumf>, %55, %cst_22 [2] : vector<2x8x8xf32> to vector<2x8xf32>
    %57 = vector.shape_cast %56 : vector<2x8xf32> to vector<2x8x1xf32>
    %58 = vector.broadcast %57 : vector<2x8x1xf32> to vector<2x8x8xf32>
    %59 = arith.subf %55, %58 : vector<2x8x8xf32>
    %60 = math.exp %59 : vector<2x8x8xf32>
    %cst_23 = arith.constant dense<0.000000e+00> : vector<2x8xf32>
    %61 = vector.multi_reduction <add>, %60, %cst_23 [2] : vector<2x8x8xf32> to vector<2x8xf32>
    %62 = vector.shape_cast %61 : vector<2x8xf32> to vector<2x8x1xf32>
    %63 = tpu.reciprocal %62 {approx = true} : vector<2x8x1xf32> -> vector<2x8x1xf32>
    %64 = vector.broadcast %63 : vector<2x8x1xf32> to vector<2x8x8xf32>
    %65 = arith.mulf %60, %64 : vector<2x8x8xf32>
    %66 = arith.truncf %65 : vector<2x8x8xf32> to vector<2x8x8xbf16>
    %67 = vector.extract_strided_slice %21 {offsets = [0, 0, 8], sizes = [2, 8, 8], strides = [1, 1, 1]} : vector<2x8x32xbf16> to vector<2x8x8xbf16>
    "tpu.trace_start"() <{level = 10 : i32, message = "bqk,bkd->bqd"}> : () -> ()
    %cst_24 = arith.constant dense<0.000000e+00> : vector<2x8x8xf32>
    %68 = tpu.matmul %66, %67, %cst_24 {dimension_numbers = #tpu.dot_dimension_numbers<[2], [1], [1], [2], [0, 0, 0, 1, 1, 2], [0], [0]>} : vector<2x8x8xbf16>, vector<2x8x8xbf16>, vector<2x8x8xf32> -> vector<2x8x8xf32>
    "tpu.trace_stop"() : () -> ()
    %69 = vector.extract_strided_slice %15 {offsets = [0, 0, 16], sizes = [2, 8, 8], strides = [1, 1, 1]} : vector<2x8x32xbf16> to vector<2x8x8xbf16>
    %70 = vector.extract_strided_slice %18 {offsets = [0, 0, 16], sizes = [2, 8, 8], strides = [1, 1, 1]} : vector<2x8x32xbf16> to vector<2x8x8xbf16>
    "tpu.trace_start"() <{level = 10 : i32, message = "bqd,bkd->bqk"}> : () -> ()
    %cst_25 = arith.constant dense<0.000000e+00> : vector<2x8x8xf32>
    %71 = tpu.matmul %69, %70, %cst_25 {dimension_numbers = #tpu.dot_dimension_numbers<[2], [2], [1], [1], [0, 0, 0, 1, 1, 1], [0], [0]>} : vector<2x8x8xbf16>, vector<2x8x8xbf16>, vector<2x8x8xf32> -> vector<2x8x8xf32>
    "tpu.trace_stop"() : () -> ()
    %cst_26 = arith.constant 0.353553385 : f32
    %72 = vector.broadcast %cst_26 : f32 to vector<2x8x8xf32>
    %73 = arith.mulf %71, %72 : vector<2x8x8xf32>
    %cst_27 = arith.constant -1.000000e+10 : f32
    %74 = vector.shape_cast %24 : vector<2x1x8xi1> to vector<2x1x8xi1>
    %75 = vector.broadcast %74 : vector<2x1x8xi1> to vector<2x8x8xi1>
    %76 = vector.broadcast %cst_27 : f32 to vector<2x8x8xf32>
    %77 = arith.select %75, %73, %76 : vector<2x8x8xi1>, vector<2x8x8xf32>
    %cst_28 = arith.constant dense<0xFF800000> : vector<2x8xf32>
    %78 = vector.multi_reduction <maximumf>, %77, %cst_28 [2] : vector<2x8x8xf32> to vector<2x8xf32>
    %79 = vector.shape_cast %78 : vector<2x8xf32> to vector<2x8x1xf32>
    %80 = vector.broadcast %79 : vector<2x8x1xf32> to vector<2x8x8xf32>
    %81 = arith.subf %77, %80 : vector<2x8x8xf32>
    %82 = math.exp %81 : vector<2x8x8xf32>
    %cst_29 = arith.constant dense<0.000000e+00> : vector<2x8xf32>
    %83 = vector.multi_reduction <add>, %82, %cst_29 [2] : vector<2x8x8xf32> to vector<2x8xf32>
    %84 = vector.shape_cast %83 : vector<2x8xf32> to vector<2x8x1xf32>
    %85 = tpu.reciprocal %84 {approx = true} : vector<2x8x1xf32> -> vector<2x8x1xf32>
    %86 = vector.broadcast %85 : vector<2x8x1xf32> to vector<2x8x8xf32>
    %87 = arith.mulf %82, %86 : vector<2x8x8xf32>
    %88 = arith.truncf %87 : vector<2x8x8xf32> to vector<2x8x8xbf16>
    %89 = vector.extract_strided_slice %21 {offsets = [0, 0, 16], sizes = [2, 8, 8], strides = [1, 1, 1]} : vector<2x8x32xbf16> to vector<2x8x8xbf16>
    "tpu.trace_start"() <{level = 10 : i32, message = "bqk,bkd->bqd"}> : () -> ()
    %cst_30 = arith.constant dense<0.000000e+00> : vector<2x8x8xf32>
    %90 = tpu.matmul %88, %89, %cst_30 {dimension_numbers = #tpu.dot_dimension_numbers<[2], [1], [1], [2], [0, 0, 0, 1, 1, 2], [0], [0]>} : vector<2x8x8xbf16>, vector<2x8x8xbf16>, vector<2x8x8xf32> -> vector<2x8x8xf32>
    "tpu.trace_stop"() : () -> ()
    %91 = vector.extract_strided_slice %15 {offsets = [0, 0, 24], sizes = [2, 8, 8], strides = [1, 1, 1]} : vector<2x8x32xbf16> to vector<2x8x8xbf16>
    %92 = vector.extract_strided_slice %18 {offsets = [0, 0, 24], sizes = [2, 8, 8], strides = [1, 1, 1]} : vector<2x8x32xbf16> to vector<2x8x8xbf16>
    "tpu.trace_start"() <{level = 10 : i32, message = "bqd,bkd->bqk"}> : () -> ()
    %cst_31 = arith.constant dense<0.000000e+00> : vector<2x8x8xf32>
    %93 = tpu.matmul %91, %92, %cst_31 {dimension_numbers = #tpu.dot_dimension_numbers<[2], [2], [1], [1], [0, 0, 0, 1, 1, 1], [0], [0]>} : vector<2x8x8xbf16>, vector<2x8x8xbf16>, vector<2x8x8xf32> -> vector<2x8x8xf32>
    "tpu.trace_stop"() : () -> ()
    %cst_32 = arith.constant 0.353553385 : f32
    %94 = vector.broadcast %cst_32 : f32 to vector<2x8x8xf32>
    %95 = arith.mulf %93, %94 : vector<2x8x8xf32>
    %cst_33 = arith.constant -1.000000e+10 : f32
    %96 = vector.shape_cast %24 : vector<2x1x8xi1> to vector<2x1x8xi1>
    %97 = vector.broadcast %96 : vector<2x1x8xi1> to vector<2x8x8xi1>
    %98 = vector.broadcast %cst_33 : f32 to vector<2x8x8xf32>
    %99 = arith.select %97, %95, %98 : vector<2x8x8xi1>, vector<2x8x8xf32>
    %cst_34 = arith.constant dense<0xFF800000> : vector<2x8xf32>
    %100 = vector.multi_reduction <maximumf>, %99, %cst_34 [2] : vector<2x8x8xf32> to vector<2x8xf32>
    %101 = vector.shape_cast %100 : vector<2x8xf32> to vector<2x8x1xf32>
    %102 = vector.broadcast %101 : vector<2x8x1xf32> to vector<2x8x8xf32>
    %103 = arith.subf %99, %102 : vector<2x8x8xf32>
    %104 = math.exp %103 : vector<2x8x8xf32>
    %cst_35 = arith.constant dense<0.000000e+00> : vector<2x8xf32>
    %105 = vector.multi_reduction <add>, %104, %cst_35 [2] : vector<2x8x8xf32> to vector<2x8xf32>
    %106 = vector.shape_cast %105 : vector<2x8xf32> to vector<2x8x1xf32>
    %107 = tpu.reciprocal %106 {approx = true} : vector<2x8x1xf32> -> vector<2x8x1xf32>
    %108 = vector.broadcast %107 : vector<2x8x1xf32> to vector<2x8x8xf32>
    %109 = arith.mulf %104, %108 : vector<2x8x8xf32>
    %110 = arith.truncf %109 : vector<2x8x8xf32> to vector<2x8x8xbf16>
    %111 = vector.extract_strided_slice %21 {offsets = [0, 0, 24], sizes = [2, 8, 8], strides = [1, 1, 1]} : vector<2x8x32xbf16> to vector<2x8x8xbf16>
    "tpu.trace_start"() <{level = 10 : i32, message = "bqk,bkd->bqd"}> : () -> ()
    %cst_36 = arith.constant dense<0.000000e+00> : vector<2x8x8xf32>
    %112 = tpu.matmul %110, %111, %cst_36 {dimension_numbers = #tpu.dot_dimension_numbers<[2], [1], [1], [2], [0, 0, 0, 1, 1, 2], [0], [0]>} : vector<2x8x8xbf16>, vector<2x8x8xbf16>, vector<2x8x8xf32> -> vector<2x8x8xf32>
    "tpu.trace_stop"() : () -> ()
    %113 = tpu.concatenate %46, %68, %90, %112 in 2 : vector<2x8x8xf32>, vector<2x8x8xf32>, vector<2x8x8xf32>, vector<2x8x8xf32> -> vector<2x8x32xf32>
    %114 = vector.shape_cast %113 : vector<2x8x32xf32> to vector<16x32xf32>
    %c0_37 = arith.constant 0 : index
    %c0_38 = arith.constant 0 : index
    %c0_39 = arith.constant 0 : index
    %115 = vector.load %arg8[%c0_37, %c0_38, %c0_39] : memref<1x4x32xf32, #tpu.memory_space<vmem>>, vector<1x4x32xf32>
    %116 = vector.shape_cast %115 : vector<1x4x32xf32> to vector<4x32xf32>
    %117 = vector.extract_strided_slice %116 {offsets = [0, 0], sizes = [1, 32], strides = [1, 1]} : vector<4x32xf32> to vector<1x32xf32>
    %118 = vector.extract_strided_slice %116 {offsets = [1, 0], sizes = [1, 32], strides = [1, 1]} : vector<4x32xf32> to vector<1x32xf32>
    %119 = vector.extract_strided_slice %116 {offsets = [2, 0], sizes = [1, 32], strides = [1, 1]} : vector<4x32xf32> to vector<1x32xf32>
    %120 = vector.extract_strided_slice %116 {offsets = [3, 0], sizes = [1, 32], strides = [1, 1]} : vector<4x32xf32> to vector<1x32xf32>
    %121 = arith.truncf %114 : vector<16x32xf32> to vector<16x32xbf16>
    %c0_40 = arith.constant 0 : index
    %c0_41 = arith.constant 0 : index
    %c0_42 = arith.constant 0 : index
    %122 = vector.load %arg7[%c0_40, %c0_41, %c0_42] : memref<1x32x32xbf16, #tpu.memory_space<vmem>>, vector<1x32x32xbf16>
    %123 = vector.shape_cast %122 : vector<1x32x32xbf16> to vector<32x32xbf16>
    %cst_43 = arith.constant dense<0.000000e+00> : vector<16x32xf32>
    %124 = tpu.matmul %121, %123, %cst_43 {dimension_numbers = #tpu.dot_dimension_numbers<[1], [0], [0], [1], [0, 0, 1, 1], [], []>} : vector<16x32xbf16>, vector<32x32xbf16>, vector<16x32xf32> -> vector<16x32xf32>
    %125 = vector.broadcast %117 : vector<1x32xf32> to vector<16x32xf32>
    %126 = arith.addf %124, %125 : vector<16x32xf32>
    %127 = arith.addf %4, %126 : vector<16x32xf32>
    %cst_44 = arith.constant dense<0.000000e+00> : vector<16xf32>
    %128 = vector.multi_reduction <add>, %127, %cst_44 [1] : vector<16x32xf32> to vector<16xf32>
    %129 = vector.shape_cast %128 : vector<16xf32> to vector<16x1xf32>
    %cst_45 = arith.constant 3.200000e+01 : f32
    %130 = vector.broadcast %cst_45 : f32 to vector<16x1xf32>
    %131 = arith.divf %129, %130 : vector<16x1xf32>
    %132 = vector.broadcast %131 : vector<16x1xf32> to vector<16x32xf32>
    %133 = arith.subf %127, %132 : vector<16x32xf32>
    %134 = arith.mulf %133, %133 : vector<16x32xf32>
    %cst_46 = arith.constant dense<0.000000e+00> : vector<16xf32>
    %135 = vector.multi_reduction <add>, %134, %cst_46 [1] : vector<16x32xf32> to vector<16xf32>
    %136 = vector.shape_cast %135 : vector<16xf32> to vector<16x1xf32>
    %cst_47 = arith.constant 3.200000e+01 : f32
    %137 = vector.broadcast %cst_47 : f32 to vector<16x1xf32>
    %138 = arith.divf %136, %137 : vector<16x1xf32>
    %139 = vector.broadcast %131 : vector<16x1xf32> to vector<16x32xf32>
    %140 = arith.subf %127, %139 : vector<16x32xf32>
    %cst_48 = arith.constant 9.99999974E-6 : f32
    %141 = vector.broadcast %cst_48 : f32 to vector<16x1xf32>
    %142 = arith.addf %138, %141 : vector<16x1xf32>
    %143 = math.rsqrt %142 : vector<16x1xf32>
    %144 = vector.broadcast %143 : vector<16x1xf32> to vector<16x32xf32>
    %145 = arith.mulf %140, %144 : vector<16x32xf32>
    %146 = vector.broadcast %118 : vector<1x32xf32> to vector<16x32xf32>
    %147 = arith.mulf %145, %146 : vector<16x32xf32>
    %148 = vector.broadcast %119 : vector<1x32xf32> to vector<16x32xf32>
    %149 = arith.addf %147, %148 : vector<16x32xf32>
    %150 = arith.truncf %149 : vector<16x32xf32> to vector<16x32xbf16>
    %c0_49 = arith.constant 0 : index
    %c0_50 = arith.constant 0 : index
    %c0_51 = arith.constant 0 : index
    %151 = vector.load %arg9[%c0_49, %c0_50, %c0_51] : memref<1x32x64xbf16, #tpu.memory_space<vmem>>, vector<1x32x64xbf16>
    %152 = vector.shape_cast %151 : vector<1x32x64xbf16> to vector<32x64xbf16>
    %cst_52 = arith.constant dense<0.000000e+00> : vector<16x64xf32>
    %153 = tpu.matmul %150, %152, %cst_52 {dimension_numbers = #tpu.dot_dimension_numbers<[1], [0], [0], [1], [0, 0, 1, 1], [], []>} : vector<16x32xbf16>, vector<32x64xbf16>, vector<16x64xf32> -> vector<16x64xf32>
    %c0_53 = arith.constant 0 : index
    %c0_54 = arith.constant 0 : index
    %c0_55 = arith.constant 0 : index
    %154 = vector.load %arg10[%c0_53, %c0_54, %c0_55] : memref<1x1x64xf32, #tpu.memory_space<vmem>>, vector<1x1x64xf32>
    %155 = vector.shape_cast %154 : vector<1x1x64xf32> to vector<1x64xf32>
    %156 = vector.broadcast %155 : vector<1x64xf32> to vector<16x64xf32>
    %157 = arith.addf %153, %156 : vector<16x64xf32>
    %cst_56 = arith.constant 0.000000e+00 : f32
    %158 = vector.broadcast %cst_56 : f32 to vector<16x64xf32>
    %159 = arith.maximumf %157, %158 : vector<16x64xf32>
    %160 = arith.truncf %159 : vector<16x64xf32> to vector<16x64xbf16>
    %c0_57 = arith.constant 0 : index
    %c0_58 = arith.constant 0 : index
    %c0_59 = arith.constant 0 : index
    %161 = vector.load %arg11[%c0_57, %c0_58, %c0_59] : memref<1x64x32xbf16, #tpu.memory_space<vmem>>, vector<1x64x32xbf16>
    %162 = vector.shape_cast %161 : vector<1x64x32xbf16> to vector<64x32xbf16>
    %cst_60 = arith.constant dense<0.000000e+00> : vector<16x32xf32>
    %163 = tpu.matmul %160, %162, %cst_60 {dimension_numbers = #tpu.dot_dimension_numbers<[1], [0], [0], [1], [0, 0, 1, 1], [], []>} : vector<16x64xbf16>, vector<64x32xbf16>, vector<16x32xf32> -> vector<16x32xf32>
    %164 = vector.broadcast %120 : vector<1x32xf32> to vector<16x32xf32>
    %165 = arith.addf %163, %164 : vector<16x32xf32>
    %166 = arith.addf %149, %165 : vector<16x32xf32>
    %cst_61 = arith.constant dense<0.000000e+00> : vector<16xf32>
    %167 = vector.multi_reduction <add>, %166, %cst_61 [1] : vector<16x32xf32> to vector<16xf32>
    %168 = vector.shape_cast %167 : vector<16xf32> to vector<16x1xf32>
    %cst_62 = arith.constant 3.200000e+01 : f32
    %169 = vector.broadcast %cst_62 : f32 to vector<16x1xf32>
    %170 = arith.divf %168, %169 : vector<16x1xf32>
    %171 = vector.broadcast %170 : vector<16x1xf32> to vector<16x32xf32>
    %172 = arith.subf %166, %171 : vector<16x32xf32>
    %173 = arith.mulf %172, %172 : vector<16x32xf32>
    %cst_63 = arith.constant dense<0.000000e+00> : vector<16xf32>
    %174 = vector.multi_reduction <add>, %173, %cst_63 [1] : vector<16x32xf32> to vector<16xf32>
    %175 = vector.shape_cast %174 : vector<16xf32> to vector<16x1xf32>
    %cst_64 = arith.constant 3.200000e+01 : f32
    %176 = vector.broadcast %cst_64 : f32 to vector<16x1xf32>
    %177 = arith.divf %175, %176 : vector<16x1xf32>
    %178 = vector.broadcast %170 : vector<16x1xf32> to vector<16x32xf32>
    %179 = arith.subf %166, %178 : vector<16x32xf32>
    %cst_65 = arith.constant 9.99999974E-6 : f32
    %180 = vector.broadcast %cst_65 : f32 to vector<16x1xf32>
    %181 = arith.addf %177, %180 : vector<16x1xf32>
    %182 = math.rsqrt %181 : vector<16x1xf32>
    %183 = vector.broadcast %182 : vector<16x1xf32> to vector<16x32xf32>
    %184 = arith.mulf %179, %183 : vector<16x32xf32>
    %185 = vector.broadcast %118 : vector<1x32xf32> to vector<16x32xf32>
    %186 = arith.mulf %184, %185 : vector<16x32xf32>
    %187 = vector.broadcast %119 : vector<1x32xf32> to vector<16x32xf32>
    %188 = arith.addf %186, %187 : vector<16x32xf32>
    %189 = vector.shape_cast %188 : vector<16x32xf32> to vector<2x8x32xf32>
    %c0_66 = arith.constant 0 : index
    %c0_67 = arith.constant 0 : index
    %c0_68 = arith.constant 0 : index
    %190 = vector.load %arg12[%c0_66, %c0_67, %c0_68] : memref<2x8x32xf32, #tpu.memory_space<vmem>>, vector<2x8x32xf32>
    tpu.vector_store %arg12[%c0_66, %c0_67, %c0_68], %189 {strides = array<i32>} : memref<2x8x32xf32, #tpu.memory_space<vmem>>, vector<2x8x32xf32>,
    return
  }
  func.func @transform_0(%arg0: i32, %arg1: i32) -> (i32, i32, i32) {
    %c0_i32 = arith.constant 0 : i32
    %c0_i32_0 = arith.constant 0 : i32
    %c0_i32_1 = arith.constant 0 : i32
    return %arg0, %c0_i32, %c0_i32_0 : i32, i32, i32
  }
  func.func @transform_1(%arg0: i32, %arg1: i32) -> (i32, i32, i32) {
    %c0_i32 = arith.constant 0 : i32
    %c0_i32_0 = arith.constant 0 : i32
    %c0_i32_1 = arith.constant 0 : i32
    %c0_i32_2 = arith.constant 0 : i32
    return %c0_i32, %c0_i32_0, %c0_i32_1 : i32, i32, i32
  }
  func.func @transform_2(%arg0: i32, %arg1: i32) -> (i32, i32, i32) {
    %c0_i32 = arith.constant 0 : i32
    %c0_i32_0 = arith.constant 0 : i32
    %c0_i32_1 = arith.constant 0 : i32
    return %arg0, %c0_i32, %c0_i32_0 : i32, i32, i32
  }
  func.func @transform_3(%arg0: i32, %arg1: i32) -> (i32, i32, i32) {
    %c0_i32 = arith.constant 0 : i32
    %c0_i32_0 = arith.constant 0 : i32
    %c0_i32_1 = arith.constant 0 : i32
    return %arg1, %c0_i32, %c0_i32_0 : i32, i32, i32
  }
  func.func @transform_4(%arg0: i32, %arg1: i32) -> (i32, i32, i32) {
    %c0_i32 = arith.constant 0 : i32
    %c0_i32_0 = arith.constant 0 : i32
    %c0_i32_1 = arith.constant 0 : i32
    return %arg1, %c0_i32, %c0_i32_0 : i32, i32, i32
  }
  func.func @transform_5(%arg0: i32, %arg1: i32) -> (i32, i32, i32) {
    %c0_i32 = arith.constant 0 : i32
    %c0_i32_0 = arith.constant 0 : i32
    %c0_i32_1 = arith.constant 0 : i32
    return %arg1, %c0_i32, %c0_i32_0 : i32, i32, i32
  }
  func.func @transform_6(%arg0: i32, %arg1: i32) -> (i32, i32, i32) {
    %c0_i32 = arith.constant 0 : i32
    %c0_i32_0 = arith.constant 0 : i32
    %c0_i32_1 = arith.constant 0 : i32
    return %arg1, %c0_i32, %c0_i32_0 : i32, i32, i32
  }
  func.func @transform_7(%arg0: i32, %arg1: i32) -> (i32, i32, i32) {
    %c0_i32 = arith.constant 0 : i32
    %c0_i32_0 = arith.constant 0 : i32
    %c0_i32_1 = arith.constant 0 : i32
    return %arg1, %c0_i32, %c0_i32_0 : i32, i32, i32
  }
  func.func @transform_8(%arg0: i32, %arg1: i32) -> (i32, i32, i32) {
    %c0_i32 = arith.constant 0 : i32
    %c0_i32_0 = arith.constant 0 : i32
    %c0_i32_1 = arith.constant 0 : i32
    return %arg1, %c0_i32, %c0_i32_0 : i32, i32, i32
  }
  func.func @transform_9(%arg0: i32, %arg1: i32) -> (i32, i32, i32) {
    %c0_i32 = arith.constant 0 : i32
    %c0_i32_0 = arith.constant 0 : i32
    %c0_i32_1 = arith.constant 0 : i32
    return %arg1, %c0_i32, %c0_i32_0 : i32, i32, i32
  }
  func.func @transform_10(%arg0: i32, %arg1: i32) -> (i32, i32, i32) {
    %c0_i32 = arith.constant 0 : i32
    %c0_i32_0 = arith.constant 0 : i32
    %c0_i32_1 = arith.constant 0 : i32
    return %arg0, %c0_i32, %c0_i32_0 : i32, i32, i32
  }
}

</mosaic_0001>

<bundles_post_ra>
// kernel: tpu_custom_call.1
= control target key start
LH: loop header
LB: loop body
LE: loop exit
PB: predicated region body
PF: predicated region fallthrough
CT: control target
= control target key end

     0   :  { %s3373_s0 = inlined_call_operand.hbm [shape: f32[2,8,32], index: 0, kind: input, shape index: {}]   ;;  %s3374_s1 = inlined_call_operand.hbm [shape: f32[1,8,32], index: 1, kind: input, shape index: {}]   ;;  %s3375_s2 = inlined_call_operand.vmem [shape: f32[2,1,8], index: 2, kind: input, shape index: {}]   ;;  %s3376_s3 = inlined_call_operand.vmem [shape: bf16[2,32,96], index: 3, kind: input, shape index: {}]   ;;  %s3377_s4 = inlined_call_operand.hbm [shape: f32[2,1,96], index: 4, kind: input, shape index: {}]   ;;  %s3378_s5 = inlined_call_operand.vmem [shape: bf16[2,32,32], index: 5, kind: input, shape index: {}]   ;;  %s3379_s6 = inlined_call_operand.hbm [shape: f32[2,4,32], index: 6, kind: input, shape index: {}]   ;;  %s3380_s7 = inlined_call_operand.vmem [shape: bf16[2,32,64], index: 7, kind: input, shape index: {}]   ;;  %s3381_s8 = inlined_call_operand.hbm [shape: f32[2,1,64], index: 8, kind: input, shape index: {}]   ;;  %s3382_s9 = inlined_call_operand.vmem [shape: bf16[2,64,32], index: 9, kind: input, shape index: {}]   ;;  %s3383_s10 = inlined_call_operand.hbm [shape: f32[2,8,32], index: 10, kind: output, shape index: {}]  }
   0x1   :  { %3400 = sst [smem:[#allocation19_spill]] %s3373_s0 }
   0x2   :  { %3401 = sst [smem:[#allocation20_spill]] %s3375_s2 }
   0x3   :  { %3402 = sst [smem:[#allocation21_spill]] %s3377_s4 }
   0x4   :  { %3403 = sst [smem:[#allocation22_spill]] %s3379_s6 }
   0x5   :  { %3404 = sst [smem:[#allocation23_spill]] %s3382_s9 }
   0x6   :  { %3405 = sst [smem:[#allocation24_spill]] %s3383_s10 }
   0x7   :  { %15 = vsyncpa [#allocation3], 0 }
   0x8   :  { %16 = vsyncpa [#allocation6], 0 }
   0x9   :  { %17 = vsyncpa [#allocation4], 0  ;;  %s2831_s13 = smov 0   ;;  %s2833_s14 = smov 0  }
   0xa   :  { %s2835_s15 = smov 0   ;;  %s2837_s16 = smov 0  }
   0xb   :  { %s2839_s17 = smov 0   ;;  %s2841_s18 = smov 0  }
   0xc LB: > { %3406 = sst [smem:[#allocation15_spill]] %s2736_s15  ;;  %s2860_s19 = sadd.s32 4294967295, %s2748_s18   ;;  %s2748_s18 = sphi %s2841_s18, %s23_s18   ;;  %s2744_s17 = sphi %s2839_s17, %s3445_s17   ;;  %s2740_s16 = sphi %s2837_s16, %s3444_s16   ;;  %s2736_s15 = sphi %s2835_s15, %s3440_s15   ;;  %s2732_s14 = sphi %s2833_s14, %s3443_s14   ;;  %s2728_s13 = sphi %s2831_s13, %s3442_s13  }
   0xd   : > { %3407 = sst [smem:[#allocation16_spill]] %s2748_s18  ;;  %p154_p0 = scmp.ne.s32.totalorder %s2732_s14, %s2728_s13 }
   0xe   : > { %p3384_p1 = scmp.eq.s32.totalorder %s2860_s19, 0  ;;  %p2092_p2 = scmp.ge.s32.totalorder %s2748_s18, 1 }
   0xf   : > { %p321_p3 = scmp.lt.s32.totalorder %s2748_s18, 3  ;;  %s2750_s22 = smov [#allocation2]  }
  0x10   : > { %p2868_p4 = por %p3384_p1, %p154_p0  ;;  %s336_s23 = sshll.u32 %s2750_s22, 4  ;;  %s337_s23 = int_to_ptr.vmem [resolvable:$true] %s336_s23 }
  0x11   : > { %p2872_p5 = pnand %p2092_p2, %p321_p3  ;;  %s32_s25 = sadd.s32 1, %s2744_s17 }
  0x12   : > { %s3408_s20 = scalar_select %p2868_p4, 1, 0 }
  0x13   : > { %s3409_s21 = scalar_select %p2872_p5, 1, 0 }
  0x14   : > { %p2354_p6 = pneg %p2872_p5  ;;  %s3411_s0 = sld [smem:[#allocation19_spill]] }
  0x16   : > { %p2880_p7 = pnand %p2354_p6, %p3384_p1 }
  0x18   : > { %s3410_s24 = scalar_select %p2880_p7, 1, 0 }
  0x19   : > { %p3391_p9 = pneg %p2880_p7 }
  0x1a   : > { %s2514_s28 = scalar_lea.hbm %s3411_s0, 256 }
  0x1b   : > { %p2515_p8 = scmp.ne.s32.totalorder %s3411_s0, %s2514_s28  ;;  %p2521_p12 = scmp.lt.u32.totalorder %s2514_s28, %s3411_s0 }
  0x1d   : > { %p2517_p10 = pnand %p3391_p9, %p2515_p8 }
  0x1f   : > { %p2518_p11 = pneg %p2517_p10 }
  0x21   : > { %p2523_p13 = pnand %p2521_p12, %p2518_p11 }
  0x23   : > { %2526 = shalt.err (!%p2523_p13)
}
  0x24   : > { %s2527_s13 = scalar_lea.vmem %s337_s23, 256  ;;  %p2535_p6 = scmp.lt.s32.totalorder %s337_s23, %s337_s23 }
  0x25   : > { %p2528_p0 = scmp.ne.s32.totalorder %s337_s23, %s2527_s13  ;;  %p2536_p1 = scmp.lt.s32.totalorder %s2527_s13, %s2527_s13 }
  0x27   : > { %p2530_p2 = pnand %p2528_p0, %p3391_p9  ;;  %p2537_p4 = por %p2536_p1, %p2535_p6 }
  0x29   : > { %p2531_p3 = pneg %p2530_p2 }
  0x2b   : > { %p2538_p5 = pnand %p2537_p4, %p2531_p3 }
  0x2d   : > { %2541 = shalt.err (!%p2538_p5)
}
  0x2e   : > { %s2751_s22 = smov 128   ;;  %s2752_s26 = smov 8  }
  0x2f   : > { %2357 = dma.hbm_to_vmem [thread:$0]  (!%p2880_p7), %s3411_s0, 256, %s337_s23, [#allocation3], %s2751_s22, %s2751_s22, %s2752_s26  }
  0x30   : > { %p33_p1 = scmp.ge.s32.totalorder %s32_s25, 2  ;;  %s141_s29 = sadd.s32 1, %s2736_s15 }
  0x31   : > { %p148_p4 = scmp.ne.s32.totalorder %s2736_s15, %s2732_s14  ;;  %p149_p5 = scmp.eq.s32.totalorder %s2748_s18, 0 }
  0x32   : > { %s3447_s25 = smov (%p33_p1, %s32_s25), 0  ;;  %p2373_p10 = scmp.lt.s32.totalorder %s2748_s18, 2 }
  0x33   : > { %3412 = sst [smem:[#allocation17_spill]] %s3447_s25  ;;  %p150_p8 = por %p149_p5, %p148_p4 }
  0x34   : > { %s138_s30 = ssub.s32 %s2744_s17, %s3447_s25  ;;  %s377_s11 = sand.u32 1, %s2748_s18  }
  0x35   : > { %p139_p11 = scmp.eq.s32.totalorder %s138_s30, 0  ;;  %s2918_s12 = sand.u32 1, %s2736_s15  }
  0x36   : > { %s3389_s13 = sshll.u32 %s2744_s17, 4  ;;  %s3414_s4 = sld [smem:[#allocation21_spill]] }
  0x37   : > { %s2922_s10 = scalar_select %p139_p11, %s2736_s15, %s141_s29  }
  0x38   : > { %s380_s27 = scalar_lea.vmem [#allocation7], %s2918_s12  ;;  %p2932_p12 = pnand %p2373_p10, %p150_p8 }
  0x39   : > { %3413 = sst [smem:[#allocation18_spill]] %s2922_s10  ;;  %s387_s28 = sshll.u32 %s380_s27, 4  ;;  %s2936_s28 = int_to_ptr.vmem [resolvable:$true] %s387_s28 }
  0x3a   : > { %s3415_s30 = scalar_select %p2932_p12, 1, 0 }
  0x3b   : > { %s2098_s29 = sshll.u32 %s2918_s12, 2  ;;  %s2939_s0 = scalar_lea.sflag [#allocation3], %s377_s11 }
  0x3c   : > { %s2929_s26 = scalar_lea.hbm %s3414_s4, %s3389_s13  ;;  %p2945_p0 = pneg %p2932_p12 }
  0x3d   : > { %s2542_s25 = scalar_lea.hbm %s2929_s26, 16  ;;  %s2547_s13 = scalar_lea.hbm %s3414_s4, 32 }
  0x3e   : > { %p2543_p13 = scmp.ne.s32.totalorder %s2929_s26, %s2542_s25  ;;  %p2548_p6 = scmp.lt.u32.totalorder %s2929_s26, %s3414_s4 }
  0x3f   : > { %s3416_s23 = scalar_select %p2945_p0, 1, 0 }
  0x40   : > { %p2545_p2 = pnand %p2945_p0, %p2543_p13  ;;  %p2549_p1 = scmp.lt.u32.totalorder %s2547_s13, %s2542_s25 }
  0x41   : > { %p2551_p5 = scmp.lt.u32.totalorder %s2542_s25, %s2929_s26 }
  0x42   : > { %p2546_p3 = pneg %p2545_p2  ;;  %p2550_p4 = por %p2549_p1, %p2548_p6 }
  0x44   : > { %p2552_p8 = por %p2551_p5, %p2550_p4 }
  0x46   : > { %p2553_p10 = pnand %p2552_p8, %p2546_p3 }
  0x48   : > { %2556 = shalt.err (!%p2553_p10)
}
  0x49   : > { %s2557_s11 = scalar_lea.vmem %s2936_s28, 16  ;;  %s2753_s22 = smov [#allocation7]  }
  0x4a   : > { %p2558_p11 = scmp.ne.s32.totalorder %s2936_s28, %s2557_s11  ;;  %s2562_s27 = sshll.u32 %s2753_s22, 4  ;;  %s2563_s27 = int_to_ptr.vmem [resolvable:$false] %s2562_s27 }
  0x4b   : > { %s2564_s10 = scalar_lea.vmem %s2563_s27, 32  ;;  %p2565_p9 = scmp.lt.s32.totalorder %s2936_s28, %s2563_s27 }
  0x4c   : > { %p2560_p13 = pnand %p2558_p11, %p2945_p0  ;;  %p2566_p7 = scmp.lt.s32.totalorder %s2564_s10, %s2557_s11 }
  0x4e   : > { %p2561_p2 = pneg %p2560_p13  ;;  %p2567_p6 = por %p2566_p7, %p2565_p9 }
  0x50   : > { %p2568_p1 = pnand %p2567_p6, %p2561_p2 }
  0x52   : > { %2571 = shalt.err (!%p2568_p1)
}
  0x53   : > { %2364 = dma.hbm_to_vmem [thread:$0]  (!%p2932_p12), %s2929_s26, 16, %s2936_s28, %s2939_s0  }
  0x54   : > { %s2099_s15 = sshll.u32 %s2744_s17, 6  ;;  %s406_s25 = scalar_lea.vmem [#allocation8], %s2098_s29 }
  0x55   : > { %s413_s13 = sshll.u32 %s406_s25, 4  ;;  %s3417_s6 = sld [smem:[#allocation22_spill]]  ;;  %s414_s13 = int_to_ptr.vmem [resolvable:$true] %s413_s13 }
  0x5b   : > { %s411_s11 = scalar_lea.hbm %s3417_s6, %s2099_s15  ;;  %s2577_s2 = scalar_lea.hbm %s3417_s6, 128 }
  0x5c   : > { %s2572_s27 = scalar_lea.hbm %s411_s11, 64  ;;  %p2578_p4 = scmp.lt.u32.totalorder %s411_s11, %s3417_s6 }
  0x5d   : > { %p2573_p7 = scmp.ne.s32.totalorder %s411_s11, %s2572_s27  ;;  %p2579_p5 = scmp.lt.u32.totalorder %s2577_s2, %s2572_s27 }
  0x5e   : > { %p2581_p10 = scmp.lt.u32.totalorder %s2572_s27, %s411_s11 }
  0x5f   : > { %p2575_p9 = pnand %p2573_p7, %p2945_p0  ;;  %p2580_p8 = por %p2579_p5, %p2578_p4 }
  0x61   : > { %p2576_p3 = pneg %p2575_p9  ;;  %p2582_p11 = por %p2581_p10, %p2580_p8 }
  0x63   : > { %p2583_p13 = pnand %p2582_p11, %p2576_p3 }
  0x65   : > { %2586 = shalt.err (!%p2583_p13)
}
  0x66   : > { %s2587_s4 = scalar_lea.vmem %s414_s13, 64  ;;  %s2754_s28 = smov [#allocation8]  }
  0x67   : > { %p2588_p2 = scmp.ne.s32.totalorder %s414_s13, %s2587_s4  ;;  %s2592_s29 = sshll.u32 %s2754_s28, 4  ;;  %s2593_s29 = int_to_ptr.vmem [resolvable:$false] %s2592_s29 }
  0x68   : > { %s2594_s18 = scalar_lea.vmem %s2593_s29, 128  ;;  %p2595_p7 = scmp.lt.s32.totalorder %s414_s13, %s2593_s29 }
  0x69   : > { %p2590_p6 = pnand %p2588_p2, %p2945_p0  ;;  %p2596_p9 = scmp.lt.s32.totalorder %s2594_s18, %s2587_s4 }
  0x6b   : > { %p2591_p1 = pneg %p2590_p6  ;;  %p2597_p12 = por %p2596_p9, %p2595_p7 }
  0x6d   : > { %p2598_p4 = pnand %p2597_p12, %p2591_p1 }
  0x6f   : > { %2601 = shalt.err (!%p2598_p4)
}
  0x70   : > { %p3418_p5 = scmp.ne.s32.totalorder %s3415_s30, 0  ;;  %s2755_s2 = smov [#allocation5]  }
  0x71   : > { %s350_s9 = sshll.u32 %s2755_s2, 4  ;;  %s3419_s15 = sshll.u32 %s2744_s17, 4  ;;  %s351_s9 = int_to_ptr.vmem [resolvable:$true] %s350_s9 }
  0x72   : > { %2367 = dma.hbm_to_vmem [thread:$0]  (!%p3418_p5), %s411_s11, 64, %s414_s13, %s2939_s0  }
  0x73   : > { %s2993_s27 = scalar_lea.hbm %s3381_s8, %s3419_s15  ;;  %s431_s10 = scalar_lea.vmem [#allocation9], %s2918_s12 }
  0x74   : > { %s438_s26 = sshll.u32 %s431_s10, 4  ;;  %s2602_s29 = scalar_lea.hbm %s3374_s1, 128  ;;  %s439_s26 = int_to_ptr.vmem [resolvable:$true] %s438_s26 }
  0x75   : > { %p2603_p12 = scmp.ne.s32.totalorder %s3374_s1, %s2602_s29  ;;  %p3420_p3 = scmp.ne.s32.totalorder %s3410_s24, 0 }
  0x76   : > { %p2609_p13 = scmp.lt.u32.totalorder %s2602_s29, %s3374_s1 }
  0x77   : > { %p3421_p8 = pneg %p3420_p3 }
  0x79   : > { %p2605_p10 = pnand %p2603_p12, %p3421_p8 }
  0x7b   : > { %p2606_p11 = pneg %p2605_p10 }
  0x7d   : > { %p2611_p2 = pnand %p2609_p13, %p2606_p11 }
  0x7f   : > { %2614 = shalt.err (!%p2611_p2)
}
  0x80   : > { %s2615_s12 = scalar_lea.vmem %s351_s9, 128  ;;  %p3422_p1 = pmov %p3421_p8 }
  0x81   : > { %p2616_p6 = scmp.ne.s32.totalorder %s351_s9, %s2615_s12  ;;  %p2623_p4 = scmp.lt.s32.totalorder %s351_s9, %s351_s9 }
  0x82   : > { %p2624_p5 = scmp.lt.s32.totalorder %s2615_s12, %s2615_s12 }
  0x83   : > { %p2618_p7 = pnand %p2616_p6, %p3422_p1 }
  0x84   : > { %p2625_p0 = por %p2624_p5, %p2623_p4 }
  0x85   : > { %p2619_p9 = pneg %p2618_p7 }
  0x87   : > { %p2626_p8 = pnand %p2625_p0, %p2619_p9 }
  0x89   : > { %2629 = shalt.err (!%p2626_p8)
}
  0x8a   : > { %2360 = dma.hbm_to_vmem [thread:$0]  (!%p3420_p3), %s3374_s1, 128, %s351_s9, [#allocation6]  }
  0x8b   : > { %s2630_s15 = scalar_lea.hbm %s2993_s27, 16  ;;  %p3423_p10 = scmp.ne.s32.totalorder %s3416_s23, 0 }
  0x8c   : > { %p2631_p12 = scmp.ne.s32.totalorder %s2993_s27, %s2630_s15  ;;  %s2635_s10 = scalar_lea.hbm %s3381_s8, 32 }
  0x8d   : > { %p2636_p0 = scmp.lt.u32.totalorder %s2993_s27, %s3381_s8  ;;  %p2637_p5 = scmp.lt.u32.totalorder %s2635_s10, %s2630_s15 }
  0x8e   : > { %p2633_p11 = pnand %p2631_p12, %p3423_p10  ;;  %p2639_p6 = scmp.lt.u32.totalorder %s2630_s15, %s2993_s27 }
  0x8f   : > { %p2638_p2 = por %p2637_p5, %p2636_p0 }
  0x90   : > { %p2634_p13 = pneg %p2633_p11 }
  0x91   : > { %p2640_p1 = por %p2639_p6, %p2638_p2 }
  0x93   : > { %p2641_p7 = pnand %p2640_p1, %p2634_p13 }
  0x95   : > { %2644 = shalt.err (!%p2641_p7)
}
  0x96   : > { %s2645_s9 = scalar_lea.vmem %s439_s26, 16  ;;  %s2756_s28 = smov [#allocation9]  }
  0x97   : > { %p2646_p3 = scmp.ne.s32.totalorder %s439_s26, %s2645_s9  ;;  %s2650_s29 = sshll.u32 %s2756_s28, 4  ;;  %s2651_s29 = int_to_ptr.vmem [resolvable:$false] %s2650_s29 }
  0x98   : > { %s2652_s18 = scalar_lea.vmem %s2651_s29, 32  ;;  %p2653_p8 = scmp.lt.s32.totalorder %s439_s26, %s2651_s29 }
  0x99   : > { %p2648_p9 = pnand %p2646_p3, %p3423_p10  ;;  %p2654_p12 = scmp.lt.s32.totalorder %s2652_s18, %s2645_s9 }
  0x9b   : > { %p2649_p4 = pneg %p2648_p9  ;;  %p2655_p11 = por %p2654_p12, %p2653_p8 }
  0x9d   : > { %p2656_p0 = pnand %p2655_p11, %p2649_p4 }
  0x9f   : > { %2659 = shalt.err (!%p2656_p0)
}
  0xa0   : > { %p3424_p5 = scmp.ne.s32.totalorder %s3415_s30, 0  ;;  %p3425_p13 = scmp.ne.s32.totalorder %s3409_s21, 0 }
  0xa1   : > { %p3426_p10 = scmp.eq.s32.totalorder (!%p3425_p13), %s2860_s19, 0 }
  0xa2   : > { %2370 = dma.hbm_to_vmem [thread:$0]  (!%p3424_p5), %s2993_s27, 16, %s439_s26, %s2939_s0  }
  0xa3   : > { %455 = sbr.rel (%p3425_p13) target bundleno = 4333 (0x10ed), region = 60 }
  0xaa   : > { %2711 = dma.done.wait (%p3426_p10), [#allocation3], 256   ;;  %p3427_p2 = pmov %p3426_p10 }
  0xac   : > { %2713 = vsyncadd (%p3427_p2), [#allocation3], 4294967040  ;;  %p3428_p6 = pmov %p3427_p2 }
  0xad   : > { %p3429_p1 = pmov %p3427_p2 }
  0xae   : > { %2715 = dma.done.wait (%p3428_p6), [#allocation6], 128  }
  0xaf   : > { %2717 = vsyncadd (%p3429_p1), [#allocation6], 4294967168  ;;  %s465_s30 = sand.u32 1, %s2860_s19   ;;  %s3046_s0 = sand.u32 1, %s2732_s14  }
  0xb0   : > { %s466_s21 = scalar_lea.sflag [#allocation3], %s465_s30  ;;  %s468_s23 = scalar_lea.vmem [#allocation7], %s3046_s0 }
  0xb1   : > { %p3430_p7 = scmp.ne.s32.totalorder %s3408_s20, 0 }
  0xb3   : > { %2719 = dma.done.wait (%p3430_p7), %s466_s21, 96  }
  0xb4   : > { %2721 = vsyncadd (%p3430_p7), %s466_s21, 4294967200  ;;  %s2104_s27 = sshll.u32 %s3046_s0, 2  ;;  %p555_p3 = scmp.lt.s32.totalorder %s2740_s16, 1 }
  0xb5   : > { %s3431_s28 = sld [smem:[#allocation23_spill]]  ;;  %s3074_s18 = scalar_lea.vmem [#allocation8], %s2104_s27 }
  0xb6   : > { %s556_s26 = scalar_select %p555_p3, %s2740_s16, 1 }
  0xb7   : > { %s485_s30 = scalar_lea.vmem [#allocation9], %s3046_s0  ;;  %p2113_p9 = scmp.ne.s32.totalorder %s2740_s16, 0 }
  0xb8   : > { %s2152_s13 = sshll.u32 %s556_s26, 4  ;;  %s2155_s11 = sshll.u32 %s556_s26, 5  ;;  %v581_v0 = vld [vmem:[#allocation2] sm:$0xff] (!%p2113_p9)  ;;  %v585_v1 = vld [vmem:[#allocation5] sm:$0xff] (!%p2113_p9)  ;;  %v582_v2 = vld [vmem:[#allocation2 + $0x8] sm:$0xff] (!%p2113_p9)  ;;  %vm588_vm0 = vcmask (!%p2113_p9), 261120  }
  0xb9   : > { %s559_s2 = scalar_lea.vmem %s3376_s3, %s2152_s13  ;;  %s3062_s22 = scalar_lea.vmem %s3378_s5, %s2152_s13  ;;  %v583_v3 = vmul.f32 (!%p2113_p9), 5.656854, %v581_v0  ;;  %v584_v4 = vmul.f32 (!%p2113_p9), 5.656854, %v582_v2 }
  0xba   : > { %s3067_s24 = scalar_lea.vmem %s3380_s7, %s2152_s13  ;;  %580 = sbr.rel (%p2113_p9) target bundleno = 193 (0xc1), region = 84 }
  0xbb   : > { %s3072_s29 = scalar_lea.vmem %s3431_s28, %s2155_s11  ;;  %v586_v5 = vadd.f32 (!%p2113_p9), %v585_v1, %v583_v3  ;;  %v587_v6 = vadd.f32 (!%p2113_p9), %v585_v1, %v584_v4 }
  0xbd   : > { %589 = vst.msk [vmem:[#allocation10] sm:$0xff] (!%p2113_p9), %vm588_vm0, %v586_v5  ;;  %590 = vst.msk [vmem:[#allocation10 + $0x8] sm:$0xff] (!%p2113_p9), %vm588_vm0, %v587_v6 }
  0xc1 PF: > { %v2464_v7 = vld [vmem:[%s559_s2] sm:$0xff]   ;;  %v2757_v8 = vmov 0.0   ;;  %v2465_v9 = vld [vmem:[%s559_s2 + $0x8] sm:$0xff]   ;;  %vm2758_vm1 = vmmov 0   ;;  %vm617_vm2 = vcmask 261120   ;;  %s2759_s16 = smov 96   ;;  %v773_v26 = vlaneseq }
  0xc2   : > { %2204 = vmatprep.subr.bf16.mxu0 %v2757_v8  ;;  %2212 = vmatprep.subr.bf16.mxu1 %v2757_v8  ;;  %v2114_v13 = vld [vmem:[%s468_s23] ss:$0 sm:$0xff]  ;;  %vm674_vm3 = vcmask 64512   ;;  %s3432_s27 = sld [smem:[#allocation20_spill]]  ;;  %v2760_v31 = vmov 0   ;;  %s2761_s11 = smov 64  }
  0xc3   : > { %2205 = vmatpush3.bf16.msra.mxu0 %v2464_v7  ;;  %2208 = vmatprep.mubr.msk.bf16.mxu0 %vm2758_vm1, %v2757_v8  ;;  %v3118_v28 = vshrl.u32 %v773_v26, 7  ;;  %s2762_s12 = smov 88   ;;  %vm814_vm8 = vcmask 1043456   ;;  %s2763_s6 = smov 120   ;;  %vm1604_vm9 = vcmask 130048   ;;  %vm1607_vm10 = vcmask 195584  }
  0xc4   : > { %v3082_v10 = vld [vmem:[#allocation10] sm:$0xff]  ;;  %v3084_v11 = vld [vmem:[#allocation10 + $0x8] sm:$0xff]  ;;  %2206 = vmatprep.subr.bf16.mxu0 %v2757_v8  ;;  %2214 = vmatprep.mubr.msk.bf16.mxu1 %vm2758_vm1, %v2757_v8  ;;  %s2764_s2 = smov 56   ;;  %s2765_s15 = smov 80   ;;  %vm1824_vm11 = vcmask 523264  }
  0xc5   : > { %v593_v12 = vpack.c.bf16 %v3084_v11, %v3082_v10  ;;  %v3124_v30 = vsub.s32 0, %v3118_v28  ;;  %s2766_s25 = smov 112   ;;  %s2767_s20 = smov 48  }
  0xc6   : > { %s2768_s10 = smov 72   ;;  %s2769_s4 = smov 104  }
  0xc7   : > { %2207 = vmatpush3.bf16.msra.mxu0 %v2465_v9  ;;  %s2770_s9 = smov 40   ;;  %s2771_s28 = smov 8  }
  0xc8   : > { %2218 = vmatprep.subr.bf16.mxu0 %v2757_v8  ;;  %v668_v27 = vld [vmem:[%s3432_s27] sm:$0x1]  ;;  %v669_v29 = vld [vmem:[%s3432_s27 + $0x1] sm:$0x1]  ;;  %s2773_s21 = smov 24   ;;  %s2774_s0 = smov [#allocation10]  }
  0xc9   : > { %vm670_vm4 = vcmp.gt.f32.partialorder %v668_v27, 0.0  ;;  %vm671_vm5 = vcmp.gt.f32.partialorder %v669_v29, 0.0  ;;  %p2376_p4 = scmp.eq.s32.totalorder %s2860_s19, 1 }
  0xca   : > { %2209 = vmatmul.mubr.msk.bf16.vlgmr.msra.gmra.mrb[0].mxu0 %vm617_vm2, %v593_v12  ;;  %v771_v32 = vsel %vm670_vm4, 1, %v2760_v31  ;;  %v772_v34 = vsel %vm671_vm5, 1, %v2760_v31 }
  0xcb   : > { %2220 = vmatprep.mubr.msk.bf16.mxu0 %vm2758_vm1, %v2757_v8  ;;  %v776_v33 = vrot.slane %v771_v32, %v3124_v30  ;;  %v780_v37 = vrot.slane %v772_v34, %v3124_v30 }
  0xcd   : > { %vm3127_vm6 = vcmp.eq.s32.totalorder %v776_v33, 1  ;;  %vm3135_vm7 = vcmp.eq.s32.totalorder %v780_v37, 1 }
 0x19d   : > { %v655_v14 = vpop.f32.mrb[0].mxu0 }
 0x19e   : > { %v656_v15 = vadd.f32 %v2114_v13, %v655_v14  ;;  %v2210_v16 = vpop.f32.mrb[1].mxu0 }
 0x19f   : > { %v658_v17 = vpop.f32.mrb[2].mxu0 }
 0x1a0   : > { %v3097_v18 = vpack.c.bf16 %v656_v15, %v656_v15  ;;  %v659_v19 = vadd.f32 %v2114_v13, %v658_v17  ;;  %v2211_v20 = vpop.f32.mrb[3].mxu0 }
 0x1a2   : > { %672 = vrot.lane.b32.xlu0 %v3097_v18, %s2759_s16  ;;  %v3100_v21 = vpack.c.bf16 %v659_v19, %v659_v19 }
 0x1a6   : > { %721 = vrot.lane.b32.xlu0 %v3100_v21, %s2759_s16  ;;  %s2772_s16 = smov 16  }
 0x214   : > { %v673_v22 = vpop.permute.xlu0 %672 }
 0x215   : > { %v679_v23 = vsel %vm674_vm3, %v673_v22, 0 }
 0x216   : > { %2213 = vmatpush3.bf16.xpose.msra.mxu1 %v679_v23 }
 0x217   : > { %2224 = vmatprep.subr.bf16.mxu1 %v2757_v8 }
 0x218   : > { %v722_v24 = vpop.permute.xlu0 %721 }
 0x219   : > { %v727_v25 = vsel %vm674_vm3, %v722_v24, 0 }
 0x21a   : > { %2219 = vmatpush3.bf16.xpose.msra.mxu0 %v727_v25 }
 0x21b   : > { %2230 = vmatprep.subr.bf16.mxu0 %v2757_v8 }
 0x21d   : > { %2215 = vmatmul.mubr.msk.bf16.vlgmr.msra.gmra.mrb[0].mxu1 %vm674_vm3, %v3097_v18 }
 0x21e   : > { %2226 = vmatprep.mubr.msk.bf16.mxu1 %vm2758_vm1, %v2757_v8 }
 0x221   : > { %2221 = vmatmul.mubr.msk.bf16.vlgmr.msra.gmra.mrb[4].mxu0 %vm674_vm3, %v3100_v21 }
 0x222   : > { %2232 = vmatprep.mubr.msk.bf16.mxu0 %vm2758_vm1, %v2757_v8 }
 0x2f0   : > { %v715_v35 = vpop.f32.mrb[0].mxu1 }
 0x2f1   : > { %v769_v38 = vmul.f32 0.35355338, %v715_v35  ;;  %v2216_v39 = vpop.f32.mrb[1].mxu1 }
 0x2f2   : > { %v718_v40 = vpop.f32.mrb[2].mxu1 }
 0x2f3   : > { %v2217_v41 = vpop.f32.mrb[3].mxu1  ;;  %v783_v42 = vsel %vm3127_vm6, %v769_v38, -1e+10 }
 0x2f4   : > { %v763_v43 = vpop.f32.mrb[4].mxu0  ;;  %v785_v44 = vsel %vm674_vm3, %v783_v42, -inf }
 0x2f5   : > { %v770_v46 = vmul.f32 0.35355338, %v763_v43  ;;  %786 = vmax.xlane.f32.xlu1 %v785_v44  ;;  %v2222_v47 = vpop.f32.mrb[5].mxu0 }
 0x2f6   : > { %v766_v48 = vpop.f32.mrb[6].mxu0 }
 0x2f7   : > { %v2223_v49 = vpop.f32.mrb[7].mxu0  ;;  %v784_v50 = vsel %vm3135_vm7, %v770_v46, -1e+10 }
 0x2f8   : > { %v788_v51 = vsel %vm674_vm3, %v784_v50, -inf }
 0x2f9   : > { %789 = vmax.xlane.f32.xlu1 %v788_v51 }
 0x30a   : > { %809 = vrot.lane.b32.xlu1 %v3097_v18, %s2761_s11 }
 0x30e   : > { %858 = vrot.lane.b32.xlu1 %v3100_v21, %s2761_s11 }
 0x312   : > { %908 = vrot.lane.b32.xlu1 %v3097_v18, %s2762_s12 }
 0x382   : > { %v787_v52 = vpop.xlane.xlu1 %786 }
 0x383   : > { %v791_v53 = vsub.f32 %v783_v42, %v787_v52 }
 0x385   : > { %v793_v54 = vmul.f32 1.442695, %v791_v53 }
 0x386   : > { %v790_v55 = vpop.xlane.xlu1 %789 }
 0x387   : > { %2474 = vpow2.f32 %v793_v54  ;;  %v792_v56 = vsub.f32 %v784_v50, %v790_v55 }
 0x389   : > { %v795_v57 = vmul.f32 1.442695, %v792_v56 }
 0x38a   : > { %v810_v58 = vpop.permute.xlu1 %809 }
 0x38b   : > { %2476 = vpow2.f32 %v795_v57  ;;  %v816_v59 = vsel %vm814_vm8, %v810_v58, 0 }
 0x38c   : > { %2225 = vmatpush3.bf16.msra.mxu1 %v816_v59 }
 0x38d   : > { %2236 = vmatprep.subr.bf16.mxu1 %v2757_v8 }
 0x38e   : > { %v859_v60 = vpop.permute.xlu1 %858 }
 0x38f   : > { %v864_v61 = vsel %vm814_vm8, %v859_v60, 0 }
 0x390   : > { %2231 = vmatpush3.bf16.msra.mxu0 %v864_v61 }
 0x391   : > { %v2475_v62 = vpop.eup %2474  ;;  %2242 = vmatprep.subr.bf16.mxu0 %v2757_v8 }
 0x392   : > { %v797_v63 = vsel %vm674_vm3, %v2475_v62, 0.0  ;;  %v909_v2 = vpop.permute.xlu1 %908 }
 0x393   : > { %798 = vadd.xlane.f32.xlu0 %v797_v63  ;;  %v914_v12 = vsel %vm674_vm3, %v909_v2, 0 }
 0x395   : > { %v2477_v0 = vpop.eup %2476 }
 0x396   : > { %v800_v1 = vsel %vm674_vm3, %v2477_v0, 0.0 }
 0x397   : > { %801 = vadd.xlane.f32.xlu1 %v800_v1 }
 0x3a8   : > { %958 = vrot.lane.b32.xlu1 %v3100_v21, %s2762_s12 }
 0x3a9   : > { %906 = vrot.lane.b32.xlu0 %v3097_v18, %s2763_s6 }
 0x3ac   : > { %956 = vrot.lane.b32.xlu1 %v3100_v21, %s2763_s6 }
 0x420   : > { %v799_v3 = vpop.xlane.xlu0 %798 }
 0x421   : > { %2478 = vrcp.f32 %v799_v3 }
 0x424   : > { %v802_v4 = vpop.xlane.xlu1 %801  ;;  %v907_v17 = vpop.permute.xlu0 %906 }
 0x425   : > { %2480 = vrcp.f32 %v802_v4 }
 0x428   : > { %v959_v14 = vpop.permute.xlu1 %958 }
 0x429   : > { %v964_v16 = vsel %vm674_vm3, %v959_v14, 0 }
 0x42b   : > { %v2479_v5 = vpop.eup %2478 }
 0x42c   : > { %v805_v6 = vmul.f32 %v2479_v5, %v2475_v62  ;;  %v957_v19 = vpop.permute.xlu1 %956 }
 0x42e   : > { %v807_v7 = vpack.c.bf16 %v805_v6, %v805_v6 }
 0x42f   : > { %v2481_v9 = vpop.eup %2480 }
 0x430   : > { %v806_v13 = vmul.f32 %v2481_v9, %v2477_v0  ;;  %2227 = vmatmul.mubr.msk.bf16.vlgmr.msra.gmra.mrb[4].mxu1 %vm674_vm3, %v807_v7 }
 0x431   : > { %2237 = vmatpush3.bf16.xpose.msra.mxu1 %v914_v12  ;;  %2238 = vmatprep.mubr.msk.bf16.mxu1 %vm2758_vm1, %v2757_v8 }
 0x432   : > { %v808_v15 = vpack.c.bf16 %v806_v13, %v806_v13  ;;  %2248 = vmatprep.subr.bf16.mxu1 %v2757_v8 }
 0x434   : > { %2233 = vmatmul.mubr.msk.bf16.vlgmr.msra.gmra.mrb[8].mxu0 %vm674_vm3, %v808_v15 }
 0x435   : > { %2243 = vmatpush3.bf16.xpose.msra.mxu0 %v964_v16  ;;  %2244 = vmatprep.mubr.msk.bf16.mxu0 %vm2758_vm1, %v2757_v8 }
 0x436   : > { %2254 = vmatprep.subr.bf16.mxu0 %v2757_v8 }
 0x438   : > { %2239 = vmatmul.mubr.msk.bf16.vlgmr.msra.gmra.mrb[8].mxu1 %vm674_vm3, %v907_v17 }
 0x439   : > { %2250 = vmatprep.mubr.msk.bf16.mxu1 %vm2758_vm1, %v2757_v8 }
 0x43c   : > { %2245 = vmatmul.mubr.msk.bf16.vlgmr.msra.gmra.mrb[12].mxu0 %vm674_vm3, %v957_v19 }
 0x43d   : > { %2256 = vmatprep.mubr.msk.bf16.mxu0 %vm2758_vm1, %v2757_v8 }
 0x503   : > { %v3170_v20 = vpop.f32.mrb[4].mxu1 }
 0x504   : > { %v2228_v22 = vpop.f32.mrb[5].mxu1 }
 0x505   : > { %v855_v23 = vpop.f32.mrb[6].mxu1 }
 0x506   : > { %v2229_v24 = vpop.f32.mrb[7].mxu1 }
 0x507   : > { %v3172_v25 = vpop.f32.mrb[8].mxu0 }
 0x508   : > { %v2234_v26 = vpop.f32.mrb[9].mxu0 }
 0x509   : > { %v903_v27 = vpop.f32.mrb[10].mxu0 }
 0x50a   : > { %v2235_v29 = vpop.f32.mrb[11].mxu0 }
 0x50b   : > { %v950_v31 = vpop.f32.mrb[8].mxu1 }
 0x50c   : > { %v1006_v32 = vmul.f32 0.35355338, %v950_v31  ;;  %v2240_v33 = vpop.f32.mrb[9].mxu1 }
 0x50d   : > { %v953_v34 = vpop.f32.mrb[10].mxu1 }
 0x50e   : > { %v2241_v35 = vpop.f32.mrb[11].mxu1  ;;  %v1008_v37 = vsel %vm3127_vm6, %v1006_v32, -1e+10 }
 0x50f   : > { %v1000_v38 = vpop.f32.mrb[12].mxu0  ;;  %v1010_v39 = vsel %vm674_vm3, %v1008_v37, -inf }
 0x510   : > { %v1007_v40 = vmul.f32 0.35355338, %v1000_v38  ;;  %1011 = vmax.xlane.f32.xlu1 %v1010_v39  ;;  %v2246_v41 = vpop.f32.mrb[13].mxu0 }
 0x511   : > { %v1003_v42 = vpop.f32.mrb[14].mxu0 }
 0x512   : > { %v2247_v43 = vpop.f32.mrb[15].mxu0  ;;  %v1009_v44 = vsel %vm3135_vm7, %v1007_v40, -1e+10 }
 0x513   : > { %v1013_v46 = vsel %vm674_vm3, %v1009_v44, -inf }
 0x514   : > { %1014 = vmax.xlane.f32.xlu0 %v1013_v46 }
 0x521   : > { %1034 = vrot.lane.b32.xlu1 %v3097_v18, %s2764_s2 }
 0x525   : > { %1132 = vrot.lane.b32.xlu1 %v3097_v18, %s2765_s15 }
 0x52a   : > { %1082 = vrot.lane.b32.xlu0 %v3100_v21, %s2764_s2 }
 0x52e   : > { %1130 = vrot.lane.b32.xlu0 %v3097_v18, %s2766_s25 }
 0x59d   : > { %v1012_v47 = vpop.xlane.xlu1 %1011 }
 0x59e   : > { %v1016_v48 = vsub.f32 %v1008_v37, %v1012_v47 }
 0x5a0   : > { %v1018_v49 = vmul.f32 1.442695, %v1016_v48 }
 0x5a1   : > { %v1035_v50 = vpop.permute.xlu1 %1034  ;;  %v1015_v51 = vpop.xlane.xlu0 %1014 }
 0x5a2   : > { %2482 = vpow2.f32 %v1018_v49  ;;  %v1040_v52 = vsel %vm814_vm8, %v1035_v50, 0  ;;  %v1017_v53 = vsub.f32 %v1009_v44, %v1015_v51 }
 0x5a3   : > { %2249 = vmatpush3.bf16.msra.mxu1 %v1040_v52 }
 0x5a4   : > { %v1020_v54 = vmul.f32 1.442695, %v1017_v53  ;;  %2260 = vmatprep.subr.bf16.mxu1 %v2757_v8 }
 0x5a5   : > { %v1083_v55 = vpop.permute.xlu0 %1082  ;;  %v1133_v61 = vpop.permute.xlu1 %1132 }
 0x5a6   : > { %2484 = vpow2.f32 %v1020_v54  ;;  %v1088_v56 = vsel %vm814_vm8, %v1083_v55, 0  ;;  %v1138_v4 = vsel %vm674_vm3, %v1133_v61, 0 }
 0x5a7   : > { %2255 = vmatpush3.bf16.msra.mxu0 %v1088_v56 }
 0x5a8   : > { %2266 = vmatprep.subr.bf16.mxu0 %v2757_v8 }
 0x5a9   : > { %v1131_v12 = vpop.permute.xlu0 %1130 }
 0x5ac   : > { %v2483_v57 = vpop.eup %2482 }
 0x5ad   : > { %v1022_v58 = vsel %vm674_vm3, %v2483_v57, 0.0 }
 0x5ae   : > { %1023 = vadd.xlane.f32.xlu1 %v1022_v58 }
 0x5b0   : > { %v2485_v59 = vpop.eup %2484 }
 0x5b1   : > { %v1025_v60 = vsel %vm674_vm3, %v2485_v59, 0.0 }
 0x5b2   : > { %1026 = vadd.xlane.f32.xlu1 %v1025_v60 }
 0x5c3   : > { %1182 = vrot.lane.b32.xlu1 %v3100_v21, %s2765_s15 }
 0x5c7   : > { %1180 = vrot.lane.b32.xlu1 %v3100_v21, %s2766_s25 }
 0x63b   : > { %v1024_v62 = vpop.xlane.xlu1 %1023 }
 0x63c   : > { %2486 = vrcp.f32 %v1024_v62 }
 0x63f   : > { %v1027_v63 = vpop.xlane.xlu1 %1026 }
 0x640   : > { %2488 = vrcp.f32 %v1027_v63 }
 0x643   : > { %v1183_v6 = vpop.permute.xlu1 %1182 }
 0x644   : > { %v1188_v9 = vsel %vm674_vm3, %v1183_v6, 0 }
 0x646   : > { %v2487_v0 = vpop.eup %2486 }
 0x647   : > { %v1030_v1 = vmul.f32 %v2487_v0, %v2483_v57  ;;  %v1181_v13 = vpop.permute.xlu1 %1180 }
 0x649   : > { %v1032_v2 = vpack.c.bf16 %v1030_v1, %v1030_v1 }
 0x64a   : > { %v2489_v3 = vpop.eup %2488 }
 0x64b   : > { %v1031_v5 = vmul.f32 %v2489_v3, %v2485_v59  ;;  %2251 = vmatmul.mubr.msk.bf16.vlgmr.msra.gmra.mrb[12].mxu1 %vm674_vm3, %v1032_v2 }
 0x64c   : > { %2261 = vmatpush3.bf16.xpose.msra.mxu1 %v1138_v4  ;;  %2262 = vmatprep.mubr.msk.bf16.mxu1 %vm2758_vm1, %v2757_v8 }
 0x64d   : > { %v1033_v7 = vpack.c.bf16 %v1031_v5, %v1031_v5  ;;  %2272 = vmatprep.subr.bf16.mxu1 %v2757_v8 }
 0x64f   : > { %2257 = vmatmul.mubr.msk.bf16.vlgmr.msra.gmra.mrb[16].mxu0 %vm674_vm3, %v1033_v7 }
 0x650   : > { %2267 = vmatpush3.bf16.xpose.msra.mxu0 %v1188_v9  ;;  %2268 = vmatprep.mubr.msk.bf16.mxu0 %vm2758_vm1, %v2757_v8 }
 0x651   : > { %2278 = vmatprep.subr.bf16.mxu0 %v2757_v8 }
 0x653   : > { %2263 = vmatmul.mubr.msk.bf16.vlgmr.msra.gmra.mrb[16].mxu1 %vm674_vm3, %v1131_v12 }
 0x654   : > { %2274 = vmatprep.mubr.msk.bf16.mxu1 %vm2758_vm1, %v2757_v8 }
 0x657   : > { %2269 = vmatmul.mubr.msk.bf16.vlgmr.msra.gmra.mrb[20].mxu0 %vm674_vm3, %v1181_v13 }
 0x658   : > { %2280 = vmatprep.mubr.msk.bf16.mxu0 %vm2758_vm1, %v2757_v8 }
 0x71e   : > { %v3208_v14 = vpop.f32.mrb[12].mxu1 }
 0x71f   : > { %v2252_v15 = vpop.f32.mrb[13].mxu1 }
 0x720   : > { %v1079_v16 = vpop.f32.mrb[14].mxu1 }
 0x721   : > { %v2253_v17 = vpop.f32.mrb[15].mxu1 }
 0x722   : > { %v3210_v19 = vpop.f32.mrb[16].mxu0 }
 0x723   : > { %v2449_v22 = vpack.i.bf16 %v3210_v19, %v3208_v14  ;;  %v2258_v23 = vpop.f32.mrb[17].mxu0 }
 0x724   : > { %v1127_v24 = vpop.f32.mrb[18].mxu0 }
 0x725   : > { %v2259_v26 = vpop.f32.mrb[19].mxu0 }
 0x726   : > { %v1174_v27 = vpop.f32.mrb[16].mxu1 }
 0x727   : > { %v1230_v29 = vmul.f32 0.35355338, %v1174_v27  ;;  %v2264_v31 = vpop.f32.mrb[17].mxu1 }
 0x728   : > { %v1177_v32 = vpop.f32.mrb[18].mxu1 }
 0x729   : > { %v2265_v33 = vpop.f32.mrb[19].mxu1  ;;  %v1232_v34 = vsel %vm3127_vm6, %v1230_v29, -1e+10 }
 0x72a   : > { %v1224_v35 = vpop.f32.mrb[20].mxu0  ;;  %v1234_v37 = vsel %vm674_vm3, %v1232_v34, -inf }
 0x72b   : > { %v1231_v38 = vmul.f32 0.35355338, %v1224_v35  ;;  %1235 = vmax.xlane.f32.xlu0 %v1234_v37  ;;  %v2270_v39 = vpop.f32.mrb[21].mxu0 }
 0x72c   : > { %v1227_v40 = vpop.f32.mrb[22].mxu0 }
 0x72d   : > { %v2271_v41 = vpop.f32.mrb[23].mxu0  ;;  %v1233_v42 = vsel %vm3135_vm7, %v1231_v38, -1e+10 }
 0x72e   : > { %v1237_v43 = vsel %vm674_vm3, %v1233_v42, -inf }
 0x72f   : > { %1238 = vmax.xlane.f32.xlu1 %v1237_v43 }
 0x740   : > { %1258 = vrot.lane.b32.xlu1 %v3097_v18, %s2767_s20 }
 0x744   : > { %1356 = vrot.lane.b32.xlu1 %v3097_v18, %s2768_s10 }
 0x748   : > { %1406 = vrot.lane.b32.xlu1 %v3100_v21, %s2768_s10 }
 0x74c   : > { %1404 = vrot.lane.b32.xlu1 %v3100_v21, %s2769_s4 }
 0x7b8   : > { %v1236_v44 = vpop.xlane.xlu0 %1235 }
 0x7b9   : > { %v1240_v46 = vsub.f32 %v1232_v34, %v1236_v44 }
 0x7bb   : > { %v1242_v47 = vmul.f32 1.442695, %v1240_v46 }
 0x7bc   : > { %v1239_v48 = vpop.xlane.xlu1 %1238 }
 0x7bd   : > { %2490 = vpow2.f32 %v1242_v47  ;;  %v1241_v49 = vsub.f32 %v1233_v42, %v1239_v48 }
 0x7bf   : > { %v1244_v50 = vmul.f32 1.442695, %v1241_v49 }
 0x7c0   : > { %v1259_v51 = vpop.permute.xlu1 %1258 }
 0x7c1   : > { %2492 = vpow2.f32 %v1244_v50  ;;  %v1264_v52 = vsel %vm814_vm8, %v1259_v51, 0 }
 0x7c2   : > { %2273 = vmatpush3.bf16.msra.mxu1 %v1264_v52 }
 0x7c3   : > { %2284 = vmatprep.subr.bf16.mxu1 %v2757_v8 }
 0x7c4   : > { %v1357_v62 = vpop.permute.xlu1 %1356 }
 0x7c5   : > { %v1362_v2 = vsel %vm674_vm3, %v1357_v62, 0  ;;  %v2467_v62 = vld [vmem:[%s3062_s22 + $0x8] sm:$0xff]  }
 0x7c7   : > { %v2491_v53 = vpop.eup %2490 }
 0x7c8   : > { %v1246_v54 = vsel %vm674_vm3, %v2491_v53, 0.0  ;;  %v1407_v4 = vpop.permute.xlu1 %1406 }
 0x7c9   : > { %1247 = vadd.xlane.f32.xlu0 %v1246_v54  ;;  %v1412_v6 = vsel %vm674_vm3, %v1407_v4, 0 }
 0x7cb   : > { %v2493_v55 = vpop.eup %2492 }
 0x7cc   : > { %v1249_v56 = vsel %vm674_vm3, %v2493_v55, 0.0  ;;  %v1405_v9 = vpop.permute.xlu1 %1404 }
 0x7cd   : > { %1250 = vadd.xlane.f32.xlu0 %v1249_v56 }
 0x7e3   : > { %1306 = vrot.lane.b32.xlu0 %v3100_v21, %s2767_s20 }
 0x7e7   : > { %1354 = vrot.lane.b32.xlu0 %v3097_v18, %s2769_s4 }
 0x856   : > { %v1248_v57 = vpop.xlane.xlu0 %1247 }
 0x857   : > { %2494 = vrcp.f32 %v1248_v57 }
 0x85a   : > { %v1251_v58 = vpop.xlane.xlu0 %1250 }
 0x85b   : > { %2496 = vrcp.f32 %v1251_v58 }
 0x85e   : > { %v1307_v59 = vpop.permute.xlu0 %1306 }
 0x85f   : > { %v1312_v60 = vsel %vm814_vm8, %v1307_v59, 0 }
 0x860   : > { %2279 = vmatpush3.bf16.msra.mxu0 %v1312_v60 }
 0x861   : > { %v2495_v61 = vpop.eup %2494  ;;  %2290 = vmatprep.subr.bf16.mxu0 %v2757_v8 }
 0x862   : > { %v1254_v63 = vmul.f32 %v2495_v61, %v2491_v53  ;;  %v1355_v7 = vpop.permute.xlu0 %1354  ;;  %v2466_v61 = vld [vmem:[%s3062_s22] sm:$0xff]   ;;  %s1912_s22 = sshll.u32 %s2774_s0, 4  ;;  %s1913_s22 = int_to_ptr.vmem [resolvable:$true] %s1912_s22 }
 0x863   : > { %p2667_p0 = scmp.lt.s32.totalorder %s1913_s22, %s1913_s22 }
 0x864   : > { %v1256_v0 = vpack.c.bf16 %v1254_v63, %v1254_v63 }
 0x865   : > { %v2497_v1 = vpop.eup %2496 }
 0x866   : > { %v1255_v3 = vmul.f32 %v2497_v1, %v2493_v55  ;;  %2275 = vmatmul.mubr.msk.bf16.vlgmr.msra.gmra.mrb[20].mxu1 %vm674_vm3, %v1256_v0 }
 0x867   : > { %2285 = vmatpush3.bf16.xpose.msra.mxu1 %v1362_v2  ;;  %2286 = vmatprep.mubr.msk.bf16.mxu1 %vm2758_vm1, %v2757_v8 }
 0x868   : > { %v1257_v5 = vpack.c.bf16 %v1255_v3, %v1255_v3  ;;  %2296 = vmatprep.subr.bf16.mxu1 %v2757_v8 }
 0x86a   : > { %2281 = vmatmul.mubr.msk.bf16.vlgmr.msra.gmra.mrb[24].mxu0 %vm674_vm3, %v1257_v5 }
 0x86b   : > { %2291 = vmatpush3.bf16.xpose.msra.mxu0 %v1412_v6  ;;  %2292 = vmatprep.mubr.msk.bf16.mxu0 %vm2758_vm1, %v2757_v8 }
 0x86c   : > { %2302 = vmatprep.subr.bf16.mxu0 %v2757_v8 }
 0x86e   : > { %2287 = vmatmul.mubr.msk.bf16.vlgmr.msra.gmra.mrb[24].mxu1 %vm674_vm3, %v1355_v7 }
 0x86f   : > { %2298 = vmatprep.mubr.msk.bf16.mxu1 %vm2758_vm1, %v2757_v8 }
 0x872   : > { %2293 = vmatmul.mubr.msk.bf16.vlgmr.msra.gmra.mrb[28].mxu0 %vm674_vm3, %v1405_v9 }
 0x873   : > { %2304 = vmatprep.mubr.msk.bf16.mxu0 %vm2758_vm1, %v2757_v8 }
 0x939   : > { %v1300_v12 = vpop.f32.mrb[20].mxu1 }
 0x93a   : > { %v2276_v13 = vpop.f32.mrb[21].mxu1 }
 0x93b   : > { %v1303_v15 = vpop.f32.mrb[22].mxu1 }
 0x93c   : > { %v2277_v16 = vpop.f32.mrb[23].mxu1 }
 0x93d   : > { %v1348_v17 = vpop.f32.mrb[24].mxu0 }
 0x93e   : > { %v2454_v23 = vpack.i.bf16 %v1348_v17, %v1300_v12  ;;  %v2282_v24 = vpop.f32.mrb[25].mxu0 }
 0x93f   : > { %v1351_v26 = vpop.f32.mrb[26].mxu0 }
 0x940   : > { %v2283_v27 = vpop.f32.mrb[27].mxu0 }
 0x941   : > { %v1398_v29 = vpop.f32.mrb[24].mxu1 }
 0x942   : > { %v1454_v31 = vmul.f32 0.35355338, %v1398_v29  ;;  %v2288_v32 = vpop.f32.mrb[25].mxu1 }
 0x943   : > { %v1401_v33 = vpop.f32.mrb[26].mxu1 }
 0x944   : > { %v2289_v34 = vpop.f32.mrb[27].mxu1  ;;  %v1456_v35 = vsel %vm3127_vm6, %v1454_v31, -1e+10 }
 0x945   : > { %v1448_v37 = vpop.f32.mrb[28].mxu0  ;;  %v1458_v38 = vsel %vm674_vm3, %v1456_v35, -inf }
 0x946   : > { %v1455_v39 = vmul.f32 0.35355338, %v1448_v37  ;;  %1459 = vmax.xlane.f32.xlu0 %v1458_v38  ;;  %v2294_v40 = vpop.f32.mrb[29].mxu0  ;;  %v3284_v37 = vld [vmem:[%s3074_s18] sm:$0xf] }
 0x947   : > { %v1451_v41 = vpop.f32.mrb[30].mxu0 }
 0x948   : > { %v2295_v42 = vpop.f32.mrb[31].mxu0  ;;  %v1457_v43 = vsel %vm3135_vm7, %v1455_v39, -1e+10 }
 0x949   : > { %v1461_v44 = vsel %vm674_vm3, %v1457_v43, -inf }
 0x94a   : > { %1462 = vmax.xlane.f32.xlu1 %v1461_v44 }
 0x95b   : > { %1482 = vrot.lane.b32.xlu1 %v3097_v18, %s2770_s9 }
 0x95f   : > { %2450 = vrot.lane.b32.xlu1 %v2449_v22, %s2771_s28 }
 0x963   : > { %2455 = vrot.lane.b32.xlu1 %v2454_v23, %s2772_s16 }
 0x9d3   : > { %v1460_v36 = vpop.xlane.xlu0 %1459 }
 0x9d4   : > { %v1464_v46 = vsub.f32 %v1456_v35, %v1460_v36 }
 0x9d6   : > { %v1466_v47 = vmul.f32 1.442695, %v1464_v46 }
 0x9d7   : > { %v1463_v48 = vpop.xlane.xlu1 %1462 }
 0x9d8   : > { %2498 = vpow2.f32 %v1466_v47  ;;  %v1465_v45 = vsub.f32 %v1457_v43, %v1463_v48 }
 0x9da   : > { %v1468_v49 = vmul.f32 1.442695, %v1465_v45 }
 0x9db   : > { %v1483_v50 = vpop.permute.xlu1 %1482 }
 0x9dc   : > { %2500 = vpow2.f32 %v1468_v49  ;;  %v1488_v51 = vsel %vm814_vm8, %v1483_v50, 0 }
 0x9dd   : > { %2297 = vmatpush3.bf16.msra.mxu1 %v1488_v51 }
 0x9de   : > { %2308 = vmatprep.subr.bf16.mxu1 %v2757_v8 }
 0x9df   : > { %v2451_v9 = vpop.permute.xlu1 %2450 }
 0x9e0   : > { %v2453_v13 = vunpack.i.h.bf16 %v2451_v9  ;;  %v2452_v15 = vunpack.i.l.bf16 %v2451_v9  ;;  %v2473_v9 = vld [vmem:[%s3072_s29 + $0x18] sm:$0xff]  }
 0x9e2   : > { %v2499_v18 = vpop.eup %2498  ;;  %v1603_v24 = vsel %vm674_vm3, %v3172_v25, %v2453_v13  ;;  %v1602_v26 = vsel %vm674_vm3, %v3170_v20, %v2452_v15  ;;  %v1619_v25 = vrot.slane %v3284_v37, %v3124_v30 }
 0x9e3   : > { %v1470_v14 = vsel %vm674_vm3, %v2499_v18, 0.0  ;;  %v2456_v12 = vpop.permute.xlu1 %2455 }
 0x9e4   : > { %1471 = vadd.xlane.f32.xlu0 %v1470_v14  ;;  %v2458_v16 = vunpack.i.h.bf16 %v2456_v12  ;;  %v2457_v17 = vunpack.i.l.bf16 %v2456_v12  ;;  %v2468_v14 = vld [vmem:[%s3067_s24] sm:$0xff]  }
 0x9e5   : > { %v2139_v12 = vld [vmem:[%s485_s30] ss:$0 sm:$0xff] }
 0x9e6   : > { %v2501_v19 = vpop.eup %2500  ;;  %v1605_v31 = vsel %vm1604_vm9, %v1602_v26, %v2457_v17  ;;  %v1606_v32 = vsel %vm1604_vm9, %v1603_v24, %v2458_v16 }
 0x9e7   : > { %v1473_v22 = vsel %vm674_vm3, %v2501_v19, 0.0 }
 0x9e8   : > { %1474 = vadd.xlane.f32.xlu0 %v1473_v22  ;;  %v2470_v22 = vld [vmem:[%s3072_s29] sm:$0xff]  }
 0x9fe   : > { %1530 = vrot.lane.b32.xlu0 %v3100_v21, %s2770_s9 }
 0xa71   : > { %v1472_v52 = vpop.xlane.xlu0 %1471 }
 0xa72   : > { %2502 = vrcp.f32 %v1472_v52  ;;  %v2471_v52 = vld [vmem:[%s3072_s29 + $0x8] sm:$0xff]  }
 0xa75   : > { %v1475_v53 = vpop.xlane.xlu0 %1474 }
 0xa76   : > { %2504 = vrcp.f32 %v1475_v53 }
 0xa79   : > { %v1531_v54 = vpop.permute.xlu0 %1530 }
 0xa7a   : > { %v1536_v55 = vsel %vm814_vm8, %v1531_v54, 0 }
 0xa7b   : > { %2303 = vmatpush3.bf16.msra.mxu0 %v1536_v55 }
 0xa7c   : > { %v2503_v56 = vpop.eup %2502  ;;  %2316 = vmatprep.subr.bf16.mxu0 %v2757_v8 }
 0xa7d   : > { %v1478_v57 = vmul.f32 %v2503_v56, %v2499_v18 }
 0xa7f   : > { %v1480_v58 = vpack.c.bf16 %v1478_v57, %v1478_v57 }
 0xa80   : > { %v2505_v59 = vpop.eup %2504 }
 0xa81   : > { %v1479_v60 = vmul.f32 %v2505_v59, %v2501_v19  ;;  %2299 = vmatmul.mubr.msk.bf16.vlgmr.msra.gmra.mrb[28].mxu1 %vm674_vm3, %v1480_v58  ;;  %v2469_v19 = vld [vmem:[%s3067_s24 + $0x8] sm:$0xff]   ;;  %v1707_v59 = vsub.s32 1, %v3118_v28  ;;  %s2660_s24 = scalar_lea.vmem %s1913_s22, 256 }
 0xa82   : > { %2312 = vmatprep.mubr.msk.bf16.mxu1 %vm2758_vm1, %v2757_v8  ;;  %2309 = vmatpush3.bf16.msra.mxu1 %v2466_v61  ;;  %p2661_p8 = scmp.ne.s32.totalorder %s1913_s22, %s2660_s24  ;;  %p2668_p5 = scmp.lt.s32.totalorder %s2660_s24, %s2660_s24 }
 0xa83   : > { %v1481_v21 = vpack.c.bf16 %v1479_v60, %v1479_v60  ;;  %2310 = vmatprep.subr.bf16.mxu1 %v2757_v8  ;;  %v3303_v60 = vrot.slane %v3284_v37, %v1707_v59 }
 0xa84   : > { %p2662_p12 = pnand %p2661_p8, %p2376_p4  ;;  %p2669_p13 = por %p2668_p5, %p2667_p0 }
 0xa85   : > { %2305 = vmatmul.mubr.msk.bf16.vlgmr.msra.gmra.mrb[32].mxu0 %vm674_vm3, %v1481_v21  ;;  %v1713_v21 = vsub.s32 2, %v3118_v28 }
 0xa86   : > { %2320 = vmatprep.mubr.msk.bf16.mxu0 %vm2758_vm1, %v2757_v8  ;;  %2311 = vmatpush3.bf16.msra.mxu1 %v2467_v62  ;;  %p2663_p11 = pneg %p2662_p12 }
 0xa87   : > { %2324 = vmatprep.subr.bf16.mxu1 %v2757_v8  ;;  %2317 = vmatpush3.bf16.msra.mxu0 %v2468_v14 }
 0xa88   : > { %2318 = vmatprep.subr.bf16.mxu0 %v2757_v8  ;;  %p2670_p10 = pnand %p2669_p13, %p2663_p11 }
 0xa8b   : > { %2319 = vmatpush3.bf16.msra.mxu0 %v2469_v19 }
 0xb54   : > { %v1524_v63 = vpop.f32.mrb[28].mxu1 }
 0xb55   : > { %v2300_v0 = vpop.f32.mrb[29].mxu1 }
 0xb56   : > { %v1527_v1 = vpop.f32.mrb[30].mxu1  ;;  %v3307_v0 = vrot.slane %v3284_v37, %v1713_v21 }
 0xb57   : > { %v2301_v2 = vpop.f32.mrb[31].mxu1 }
 0xb58   : > { %v1572_v3 = vpop.f32.mrb[32].mxu0 }
 0xb59   : > { %v2459_v4 = vpack.i.bf16 %v1572_v3, %v1524_v63  ;;  %v2306_v5 = vpop.f32.mrb[33].mxu0 }
 0xb5a   : > { %v1575_v6 = vpop.f32.mrb[34].mxu0 }
 0xb5b   : > { %2460 = vrot.lane.b32.xlu0 %v2459_v4, %s2773_s21  ;;  %v2307_v7 = vpop.f32.mrb[35].mxu0 }
 0xb5c   : > { %v2472_v7 = vld [vmem:[%s3072_s29 + $0x10] sm:$0xff]  }
 0xbcd   : > { %v2461_v23 = vpop.permute.xlu0 %2460 }
 0xbce   : > { %v2463_v27 = vunpack.i.h.bf16 %v2461_v23  ;;  %v2462_v29 = vunpack.i.l.bf16 %v2461_v23 }
 0xbd0   : > { %v1609_v33 = vsel %vm1607_vm10, %v1606_v32, %v2463_v27  ;;  %v1608_v34 = vsel %vm1607_vm10, %v1605_v31, %v2462_v29  ;;  %v1798_v31 = vsub.s32 3, %v3118_v28 }
 0xbd1   : > { %v1611_v35 = vpack.c.bf16 %v1609_v33, %v1608_v34 }
 0xbd2   : > { %v1799_v32 = vrot.slane %v3284_v37, %v1798_v31 }
 0xbd3   : > { %2313 = vmatmul.mubr.msk.bf16.vlgmr.msra.gmra.mrb[32].mxu1 %vm617_vm2, %v1611_v35 }
 0xbd4   : > { %2332 = vmatprep.mubr.msk.bf16.mxu1 %vm2758_vm1, %v2757_v8  ;;  %2325 = vmatpush3.bf16.msra.mxu1 %v2470_v22 }
 0xbd5   : > { %2326 = vmatprep.subr.bf16.mxu1 %v2757_v8 }
 0xbd8   : > { %2327 = vmatpush3.bf16.msra.mxu1 %v2471_v52 }
 0xbd9   : > { %2328 = vmatprep.subr.bf16.mxu1 %v2757_v8 }
 0xbdc   : > { %2329 = vmatpush3.bf16.msra.mxu1 %v2472_v7 }
 0xbdd   : > { %2330 = vmatprep.subr.bf16.mxu1 %v2757_v8 }
 0xbe0   : > { %2331 = vmatpush3.bf16.msra.mxu1 %v2473_v9 }
 0xca6   : > { %v1669_v38 = vpop.f32.mrb[32].mxu1 }
 0xca7   : > { %v1670_v39 = vadd.f32 %v1669_v38, %v1619_v25  ;;  %v2314_v20 = vpop.f32.mrb[33].mxu1 }
 0xca8   : > { %v1672_v40 = vpop.f32.mrb[34].mxu1 }
 0xca9   : > { %v1673_v41 = vadd.f32 %v1672_v40, %v1619_v25  ;;  %v2315_v42 = vpop.f32.mrb[35].mxu1  ;;  %v1676_v43 = vadd.f32 %v1670_v39, %v3082_v10 }
 0xcab   : > { %v1678_v44 = vsel %vm617_vm2, %v1676_v43, 0.0  ;;  %v1677_v36 = vadd.f32 %v1673_v41, %v3084_v11 }
 0xcac   : > { %1679 = vadd.xlane.f32.xlu1 %v1678_v44 }
 0xcad   : > { %v1681_v46 = vsel %vm617_vm2, %v1677_v36, 0.0 }
 0xcae   : > { %1682 = vadd.xlane.f32.xlu0 %v1681_v46 }
 0xd39   : > { %v1680_v47 = vpop.xlane.xlu1 %1679 }
 0xd3a   : > { %v1685_v30 = vmul.f32 0.03125, %v1680_v47 }
 0xd3b   : > { %v1683_v48 = vpop.xlane.xlu0 %1682 }
 0xd3c   : > { %v1687_v45 = vsub.f32 %v1676_v43, %v1685_v30  ;;  %v1686_v49 = vmul.f32 0.03125, %v1683_v48 }
 0xd3e   : > { %v1688_v50 = vsub.f32 %v1677_v36, %v1686_v49  ;;  %v1689_v51 = vmul.f32 %v1687_v45, %v1687_v45 }
 0xd40   : > { %v1691_v10 = vsel %vm617_vm2, %v1689_v51, 0.0  ;;  %v1690_v18 = vmul.f32 %v1688_v50, %v1688_v50 }
 0xd41   : > { %1692 = vadd.xlane.f32.xlu0 %v1691_v10 }
 0xd42   : > { %v1694_v11 = vsel %vm617_vm2, %v1690_v18, 0.0 }
 0xd43   : > { %1695 = vadd.xlane.f32.xlu1 %v1694_v11 }
 0xdce   : > { %v1693_v53 = vpop.xlane.xlu0 %1692 }
 0xdcf   : > { %v1697_v54 = vmul.f32 0.03125, %v1693_v53 }
 0xdd0   : > { %v1696_v55 = vpop.xlane.xlu1 %1695 }
 0xdd1   : > { %v1699_v56 = vadd.f32 1e-05, %v1697_v54  ;;  %v1698_v57 = vmul.f32 0.03125, %v1696_v55 }
 0xdd3   : > { %2506 = vrsqrt.f32 %v1699_v56  ;;  %v1700_v58 = vadd.f32 1e-05, %v1698_v57 }
 0xdd5   : > { %2508 = vrsqrt.f32 %v1700_v58 }
 0xddd   : > { %v2507_v61 = vpop.eup %2506 }
 0xdde   : > { %v1703_v62 = vmul.f32 %v2507_v61, %v1687_v45 }
 0xddf   : > { %v2509_v63 = vpop.eup %2508 }
 0xde0   : > { %v1709_v1 = vmul.f32 %v3303_v60, %v1703_v62  ;;  %v1704_v2 = vmul.f32 %v2509_v63, %v1688_v50 }
 0xde2   : > { %v1710_v3 = vmul.f32 %v3303_v60, %v1704_v2  ;;  %v1715_v4 = vadd.f32 %v3307_v0, %v1709_v1 }
 0xde4   : > { %v1716_v5 = vadd.f32 %v3307_v0, %v1710_v3 }
 0xde6   : > { %v1717_v6 = vpack.c.bf16 %v1716_v5, %v1715_v4 }
 0xde8   : > { %2321 = vmatmul.mubr.msk.bf16.vlgmr.msra.gmra.mrb[36].mxu0 %vm617_vm2, %v1717_v6 }
 0xebb   : > { %v1778_v13 = vpop.f32.mrb[36].mxu0 }
 0xebc   : > { %v1779_v15 = vadd.f32 %v2139_v12, %v1778_v13  ;;  %v2322_v16 = vpop.f32.mrb[37].mxu0 }
 0xebd   : > { %v1781_v17 = vpop.f32.mrb[38].mxu0 }
 0xebe   : > { %v1782_v23 = vadd.f32 %v2139_v12, %v1781_v17  ;;  %v2323_v24 = vpop.f32.mrb[39].mxu0  ;;  %v1785_v26 = vmax.f32 %v1779_v15, 0.0 }
 0xec0   : > { %v1786_v27 = vmax.f32 %v1782_v23, 0.0 }
 0xec2   : > { %v1787_v29 = vpack.c.bf16 %v1786_v27, %v1785_v26 }
 0xec4   : > { %2333 = vmatmul.mubr.msk.bf16.vlgmr.msra.gmra.mrb[36].mxu1 %vm1824_vm11, %v1787_v29 }
 0xf97   : > { %v1862_v8 = vpop.f32.mrb[36].mxu1 }
 0xf98   : > { %v1863_v33 = vadd.f32 %v1862_v8, %v1799_v32  ;;  %v2334_v34 = vpop.f32.mrb[37].mxu1 }
 0xf99   : > { %v1865_v35 = vpop.f32.mrb[38].mxu1 }
 0xf9a   : > { %v1866_v25 = vadd.f32 %v1865_v35, %v1799_v32  ;;  %v2335_v38 = vpop.f32.mrb[39].mxu1  ;;  %v1869_v39 = vadd.f32 %v1863_v33, %v1715_v4 }
 0xf9c   : > { %v1871_v20 = vsel %vm617_vm2, %v1869_v39, 0.0  ;;  %v1870_v40 = vadd.f32 %v1866_v25, %v1716_v5 }
 0xf9d   : > { %1872 = vadd.xlane.f32.xlu0 %v1871_v20 }
 0xf9e   : > { %v1874_v41 = vsel %vm617_vm2, %v1870_v40, 0.0 }
 0xf9f   : > { %1875 = vadd.xlane.f32.xlu1 %v1874_v41 }
0x102a   : > { %v1873_v42 = vpop.xlane.xlu0 %1872 }
0x102b   : > { %v1877_v43 = vmul.f32 0.03125, %v1873_v42 }
0x102c   : > { %v1876_v44 = vpop.xlane.xlu1 %1875 }
0x102d   : > { %v1879_v28 = vsub.f32 %v1869_v39, %v1877_v43  ;;  %v1878_v36 = vmul.f32 0.03125, %v1876_v44 }
0x102f   : > { %v1880_v37 = vsub.f32 %v1870_v40, %v1878_v36  ;;  %v1881_v46 = vmul.f32 %v1879_v28, %v1879_v28 }
0x1031   : > { %v1883_v47 = vsel %vm617_vm2, %v1881_v46, 0.0  ;;  %v1882_v30 = vmul.f32 %v1880_v37, %v1880_v37 }
0x1032   : > { %1884 = vadd.xlane.f32.xlu0 %v1883_v47 }
0x1033   : > { %v1886_v48 = vsel %vm617_vm2, %v1882_v30, 0.0 }
0x1034   : > { %1887 = vadd.xlane.f32.xlu1 %v1886_v48 }
0x10bf   : > { %v1885_v45 = vpop.xlane.xlu0 %1884 }
0x10c0   : > { %v1889_v49 = vmul.f32 0.03125, %v1885_v45 }
0x10c1   : > { %v1888_v50 = vpop.xlane.xlu1 %1887 }
0x10c2   : > { %v1891_v51 = vadd.f32 1e-05, %v1889_v49  ;;  %v1890_v10 = vmul.f32 0.03125, %v1888_v50 }
0x10c4   : > { %2510 = vrsqrt.f32 %v1891_v51  ;;  %v1892_v18 = vadd.f32 1e-05, %v1890_v10 }
0x10c6   : > { %2512 = vrsqrt.f32 %v1892_v18 }
0x10ce   : > { %v2511_v11 = vpop.eup %2510 }
0x10cf   : > { %v1895_v14 = vmul.f32 %v2511_v11, %v1879_v28 }
0x10d0   : > { %v2513_v19 = vpop.eup %2512 }
0x10d1   : > { %v1897_v22 = vmul.f32 %v1895_v14, %v3303_v60  ;;  %v1896_v52 = vmul.f32 %v2513_v19, %v1880_v37 }
0x10d3   : > { %v1898_v53 = vmul.f32 %v1896_v52, %v3303_v60  ;;  %v1899_v54 = vadd.f32 %v1897_v22, %v3307_v0 }
0x10d5   : > { %v1900_v55 = vadd.f32 %v1898_v53, %v3307_v0  ;;  %1901 = vst.msk [vmem:[#allocation10] sm:$0xff] %vm617_vm2, %v1899_v54 }
0x10d7   : > { %1902 = vst.msk [vmem:[#allocation10 + $0x8] sm:$0xff] %vm617_vm2, %v1900_v55 }
0x10d8   : > { %2673 = shalt.err (!%p2670_p10)
}
0x10d9   : > { %s3437_s30 = sld [smem:[#allocation24_spill]] }
0x10df   : > { %s2674_s23 = scalar_lea.hbm %s3437_s30, 256 }
0x10e0   : > { %p2675_p2 = scmp.ne.s32.totalorder %s3437_s30, %s2674_s23  ;;  %p2680_p7 = scmp.lt.u32.totalorder %s2674_s23, %s3437_s30 }
0x10e2   : > { %p2676_p6 = pnand %p2675_p2, %p2376_p4 }
0x10e4   : > { %p2677_p1 = pneg %p2676_p6 }
0x10e6   : > { %p2682_p3 = pnand %p2680_p7, %p2677_p1 }
0x10e8   : > { %2685 = shalt.err (!%p2682_p3)
}
0x10e9   : > { %s2775_s6 = smov 128  }
0x10ea   : > { %2351 = dma.vmem_to_hbm [thread:$0]  (%p2376_p4), %s1913_s22, 256, %s3437_s30, [#allocation4], %s2775_s6, %s2775_s6, %s2771_s28  }
0x10eb   : > { %2723 = dma.done.wait (%p2376_p4), [#allocation4], 256  }
0x10ec   : > { %2725 = vsyncadd (%p2376_p4), [#allocation4], 4294967040 }
0x10ed PF: > { %s3438_s25 = sld [smem:[#allocation16_spill]]  ;;  %s3439_s20 = sld [smem:[#allocation15_spill]] }
0x10ee   : > { %s3440_s15 = sld [smem:[#allocation18_spill]]  ;;  %s3441_s10 = sld [smem:[#allocation17_spill]] }
0x10ef   : > { %s3442_s13 = smov %s2732_s14  ;;  %s3444_s16 = smov %s2744_s17 }
0x10f3   : > { %s23_s18 = sadd.s32 1, %s3438_s25   ;;  %s3443_s14 = smov %s3439_s20 }
0x10f4   : > { %p20_p9 = scmp.ge.s32.totalorder %s23_s18, 4   ;;  %s3445_s17 = smov %s3441_s10 }
0x10f6   :  { %22 = sbr.rel (!%p20_p9) target bundleno = 12 (0xc), region = 147 }
0x10fd   :  { %1928 = vsyncpa [#allocation3], 1 }
0x10fe   :  { %1930 = vsyncpa [#allocation3 + $0x1], 1 }
0x10ff   :  { %1931 = vsyncpa [#allocation6], 1 }
0x1100   :  { %1932 = vsyncpa [#allocation4], 1 }
0x1101   :  { %1934 = vsyncpa [#allocation4 + $0x1], 1 }

</bundles_post_ra>
